<compile_context>
chip_gen: v5e
topology: v5e:2x2
jax: 0.10.0
libtpu: 0.0.40
codegen_flags: <defaults>
</compile_context>

<pallas_src>
import functools

import jax
import jax.numpy as jnp
from jax.experimental import pallas as pl
from jax.experimental.pallas import tpu as pltpu


LANE = 128          # padded classifier-head width (lane-dense logits)
NEG_PAD = -1e30     # pad-lane bias (finite -> no 0*inf in CE; never wins max)


# ----------------------------- fused Pallas kernel --------------------------

def _fused_step_kernel(x_ref, lbl_ref,
                       wf_ref, bf_ref, wmv_ref, bmv_ref,
                       wd_ref, bd_ref, wo_ref, bo_ref,
                       wc2_ref, bc2_ref,
                       losses_ref, *, half):
    """Fused VAE-ELBO + classifier forward over a [4*half, D] batch.

    Row layout (4 contiguous segments of `half` rows):
      seg 0: x_sup   seg 1: x_unsup   seg 2: xv_sup   seg 3: xv_unsup
    Output losses_ref (SMEM, (8,) f32):
      [0..3] per-segment mean ELBO, [4] train CE, [5] val CE, [6] val accuracy.
    """
    f32 = jnp.float32
    bf16 = jnp.bfloat16

    x = x_ref[...]                                                    # (n, D) f32
    n = x.shape[0]
    xb = x.astype(bf16)

    # ---- fused first layer: [encoder | classifier-hidden], one K=D matmul
    h_all = jnp.tanh(jnp.dot(xb, wf_ref[...], preferred_element_type=f32)
                     + bf_ref[...])                                   # (n, 2H) f32
    h_b = h_all.astype(bf16)

    # ---- VAE branch: merged (mu|logvar) head -> KL -> decoder -> recon
    muvar = jnp.dot(h_b, wmv_ref[...], preferred_element_type=f32) + bmv_ref[...]
    z_dim = muvar.shape[1] // 2
    lane_mv = jax.lax.broadcasted_iota(jnp.int32, muvar.shape, 1)
    is_lv = lane_mv >= z_dim                                          # logvar lanes
    ex = jnp.exp(jnp.where(is_lv, muvar, 0.0))
    # mu lanes contribute -mu^2, logvar lanes contribute 1 + logvar - exp(logvar)
    kl_terms = jnp.where(is_lv, 1.0 + muvar - ex, -(muvar * muvar))
    kl = -0.5 * jnp.sum(kl_terms, axis=-1, keepdims=True)             # (n, 1)

    # decoder weight is zero-padded over the logvar rows, so this is z = mu.
    hd = jnp.tanh(jnp.dot(muvar.astype(bf16), wd_ref[...],
                          preferred_element_type=f32) + bd_ref[...])
    x_rec = jnp.dot(hd.astype(bf16), wo_ref[...],
                    preferred_element_type=f32) + bo_ref[...]
    diff = x - x_rec                                                  # x dead here
    recon = jnp.sum(diff * diff, axis=-1, keepdims=True)              # (n, 1)
    elbo_row = -(recon + kl)

    # ---- classifier branch: lane-dense logits, pad-lane bias = NEG_PAD
    logits = jnp.dot(h_b, wc2_ref[...], preferred_element_type=f32) + bc2_ref[...]
    m = jnp.max(logits, axis=-1, keepdims=True)                       # (n, 1)
    lse = jnp.log(jnp.sum(jnp.exp(logits - m), axis=-1, keepdims=True)) + m
    logp = logits - lse

    lbl = lbl_ref[...]                                                # (n, 1) int32
    lane = jax.lax.broadcasted_iota(jnp.int32, logits.shape, 1)
    onehot = lane == lbl                                              # (n, 128) bool
    ce_row = -jnp.sum(jnp.where(onehot, logp, 0.0), axis=-1, keepdims=True)

    # in-kernel "argmax == label" (ties count as correct; measure-zero here)
    label_logit = jnp.sum(jnp.where(onehot, logits, 0.0), axis=-1, keepdims=True)
    correct = (label_logit >= m).astype(f32)                          # (n, 1)

    # ---- per-segment masked means -> SMEM scalar slots (no masked vst)
    row = jax.lax.broadcasted_iota(jnp.int32, (n, 1), 0)
    inv = 1.0 / float(half)

    def seg_sum(v, s):
        msk = (row >= s * half) & (row < (s + 1) * half)
        return jnp.sum(jnp.where(msk, v, 0.0))

    losses_ref[0] = seg_sum(elbo_row, 0) * inv    # mean ELBO x_sup
    losses_ref[1] = seg_sum(elbo_row, 1) * inv    # mean ELBO x_unsup
    losses_ref[2] = seg_sum(elbo_row, 2) * inv    # mean ELBO xv_sup
    losses_ref[3] = seg_sum(elbo_row, 3) * inv    # mean ELBO xv_unsup
    losses_ref[4] = seg_sum(ce_row, 0) * inv      # train CE (supervised rows)
    losses_ref[5] = seg_sum(ce_row, 2) * inv      # val CE (xv_sup rows)
    losses_ref[6] = jnp.sum(jnp.where(row >= 2 * half, correct, 0.0)) * (0.5 * inv)
    losses_ref[7] = jnp.float32(0.0)


# ----------------------------- wrapper ---------------------------------------

def fused_step(params, x_all_flat, labels, *, half):
    n, D = x_all_flat.shape
    H2 = params["w_first"].shape[1]      # 2H
    Z2 = params["w_muvar"].shape[1]      # 2Z
    H = params["w_dec"].shape[1]

    args = (x_all_flat, labels,
            params["w_first"], params["b_first"],
            params["w_muvar"], params["b_muvar"],
            params["w_dec"], params["b_dec"],
            params["w_out"], params["b_out"],
            params["w_c2"], params["b_c2"])

    flops = 2 * n * (D * H2 + H2 * Z2 + Z2 * H + H * D + H2 * LANE)
    transcendentals = n * (H2 + H + Z2 + LANE + 1)
    bytes_accessed = sum(a.size * a.dtype.itemsize for a in args) + 8 * 4

    kern = functools.partial(_fused_step_kernel, half=half)
    losses = pl.pallas_call(
        kern,
        out_shape=jax.ShapeDtypeStruct((8,), jnp.float32),
        in_specs=[pl.BlockSpec(memory_space=pltpu.MemorySpace.VMEM)] * len(args),
        out_specs=pl.BlockSpec(memory_space=pltpu.MemorySpace.SMEM),
        cost_estimate=pl.CostEstimate(flops=flops,
                                      transcendentals=transcendentals,
                                      bytes_accessed=bytes_accessed),
    )(*args)
    return losses


def _flatten_nchw(x):
    # layout: NCHW -> [N, C*H*W]
    return x.reshape(x.shape[0], -1).astype(jnp.float32)


def trainer_forward_step(params, x_sup, y_sup, x_unsup, x_val, y_val,
                         batch_size, num_classes):
    """Forward-pass semantics of one iteration of Generative_Model_Trainer.forward()."""
    del num_classes  # classifier head width handled inside the kernel/params
    half = batch_size // 2
    alpha = 0.1 * half * 2

    # One fused batch: [x_sup | x_unsup | xv_sup | xv_unsup]  -> [2B, D]
    x_all = jnp.concatenate([_flatten_nchw(x_sup), _flatten_nchw(x_unsup),
                             _flatten_nchw(x_val[:half]), _flatten_nchw(x_val[half:])],
                            axis=0)
    n = x_all.shape[0]

    # int32 label column: supervised rows get real labels, unsupervised rows -1
    # (their one-hot mask is empty -> CE contribution exactly 0, masked anyway).
    labels = jnp.concatenate([y_sup.astype(jnp.int32),
                              jnp.full((half,), -1, jnp.int32),
                              y_val.astype(jnp.int32)], axis=0).reshape(n, 1)

    losses = fused_step(params, x_all, labels, half=half)
    e_sup, e_unsup, e_vsup, e_vunsup = losses[0], losses[1], losses[2], losses[3]
    ce_train, ce_val, acc = losses[4], losses[5], losses[6]

    # ---- training objective (forward only) ----
    L, U, CLF = -e_sup, -e_unsup, ce_train
    J = L + U + alpha * CLF

    # ---- validation objective ----
    Lv, Uv, CLFv = -e_vsup, -e_vunsup, ce_val
    Jv = Lv + Uv + alpha * CLFv

    return {"train_total_loss": J,
            "train_supervised_loss": L,
            "train_classifier_loss": CLF,
            "train_unsupervised_loss": U,
            "validation_total_loss": Jv,
            "validation_supervised_loss": Lv,
            "validation_classifier_loss": CLFv,
            "validation_unsupervised_loss": Uv,
            "validation_accuracy": acc}


# ----------------------------- parameter init --------------------------------

def init_params(key, D, H, Z, C):
    ks = jax.random.split(key, 7)

    def lin(k, fan_in, fan_out):
        scale = 1.0 / jnp.sqrt(jnp.float32(fan_in))
        return jax.random.uniform(k, (fan_in, fan_out), jnp.float32, -scale, scale)

    w_enc = lin(ks[0], D, H)
    w_c1 = lin(ks[5], D, H)
    w_mu = lin(ks[1], H, Z)
    w_lv = lin(ks[2], H, Z)
    w_dec = lin(ks[3], Z, H)
    w_out = lin(ks[4], H, D)
    w_c2 = lin(ks[6], H, C)

    bf16 = jnp.bfloat16
    zeros_HZ2 = jnp.zeros((H, 2 * Z), jnp.float32)

    return {
        # fused first layer [encoder | classifier-hidden]: (D, 2H), bf16 operands
        "w_first": jnp.concatenate([w_enc, w_c1], axis=1).astype(bf16),
        "b_first": jnp.zeros((1, 2 * H), jnp.float32),
        # merged mu|logvar head fed by the full 2H fused activations
        # (classifier half of the rows zeroed so it only sees the encoder half).
        "w_muvar": jnp.concatenate(
            [jnp.concatenate([w_mu, w_lv], axis=1), zeros_HZ2], axis=0).astype(bf16),
        "b_muvar": jnp.zeros((1, 2 * Z), jnp.float32),
        # decoder input padded to 2Z rows (zero rows under logvar lanes) -> z = mu.
        "w_dec": jnp.concatenate([w_dec, jnp.zeros((Z, H), jnp.float32)],
                                 axis=0).astype(bf16),
        "b_dec": jnp.zeros((1, H), jnp.float32),
        "w_out": w_out.astype(bf16),
        "b_out": jnp.zeros((1, D), jnp.float32),
        # classifier head fed by the full 2H fused activations (encoder half zeroed),
        # output padded to 128 lanes; pad lanes get a huge *finite* negative bias.
        "w_c2": jnp.concatenate(
            [jnp.zeros((H, LANE), jnp.float32),
             jnp.concatenate([w_c2, jnp.zeros((H, LANE - C), jnp.float32)], axis=1)],
            axis=0).astype(bf16),
        "b_c2": jnp.concatenate([jnp.zeros((1, C), jnp.float32),
                                 jnp.full((1, LANE - C), NEG_PAD, jnp.float32)],
                                axis=1),
    }


# ----------------------------- main -------------------------------------------

if __name__ == "__main__":
    key = jax.random.PRNGKey(0)
    B = 8                      # batch_size
    C_in, HW = 4, 16           # NCHW input [N, 4, 16, 16]
    D = C_in * HW * HW         # 1024 flattened features
    H, Z, NUM_CLASSES = 64, 32, 10
    half = B // 2

    kp, kxs, kys, kxu, kxv, kyv = jax.random.split(key, 6)
    params = init_params(kp, D, H, Z, NUM_CLASSES)

    x_sup = jax.random.normal(kxs, (half, C_in, HW, HW), jnp.float32)
    y_sup = jax.random.randint(kys, (half,), 0, NUM_CLASSES)
    x_unsup = jax.random.normal(kxu, (half, C_in, HW, HW), jnp.float32)
    x_val = jax.random.normal(kxv, (B, C_in, HW, HW), jnp.float32)
    y_val = jax.random.randint(kyv, (B,), 0, NUM_CLASSES)

    step = jax.jit(functools.partial(trainer_forward_step,
                                     batch_size=B, num_classes=NUM_CLASSES))
    losses = step(params, x_sup, y_sup, x_unsup, x_val, y_val)
    losses = jax.block_until_ready(losses)

    # sanity: all finite
    assert all(bool(jnp.isfinite(v)) for v in jax.tree_util.tree_leaves(losses))
    print("KERNEL_OK")
</pallas_src>

<mosaic_0001>
module attributes {stable_mosaic.version = 11 : i64} {
  func.func @_fused_step_kernel(%arg0: memref<16x1024xf32, #tpu.memory_space<vmem>>, %arg1: memref<16x1xi32, #tpu.memory_space<vmem>>, %arg2: memref<1024x128xbf16, #tpu.memory_space<vmem>>, %arg3: memref<1x128xf32, #tpu.memory_space<vmem>>, %arg4: memref<128x64xbf16, #tpu.memory_space<vmem>>, %arg5: memref<1x64xf32, #tpu.memory_space<vmem>>, %arg6: memref<64x64xbf16, #tpu.memory_space<vmem>>, %arg7: memref<1x64xf32, #tpu.memory_space<vmem>>, %arg8: memref<64x1024xbf16, #tpu.memory_space<vmem>>, %arg9: memref<1x1024xf32, #tpu.memory_space<vmem>>, %arg10: memref<128x128xbf16, #tpu.memory_space<vmem>>, %arg11: memref<1x128xf32, #tpu.memory_space<vmem>>, %arg12: memref<8xf32, #tpu.memory_space<smem>>) attributes {dimension_semantics = [], scalar_prefetch = 0 : i64, scratch_operands = 0 : i64, tpu.core_type = #tpu.core_type<tc>} {
    %c0 = arith.constant 0 : index
    %c0_0 = arith.constant 0 : index
    %0 = vector.load %arg0[%c0, %c0_0] : memref<16x1024xf32, #tpu.memory_space<vmem>>, vector<16x1024xf32>
    %1 = arith.truncf %0 : vector<16x1024xf32> to vector<16x1024xbf16>
    %c0_1 = arith.constant 0 : index
    %c0_2 = arith.constant 0 : index
    %2 = vector.load %arg2[%c0_1, %c0_2] : memref<1024x128xbf16, #tpu.memory_space<vmem>>, vector<1024x128xbf16>
    %cst = arith.constant dense<0.000000e+00> : vector<16x128xf32>
    %3 = tpu.matmul %1, %2, %cst {dimension_numbers = #tpu.dot_dimension_numbers<[1], [0], [0], [1], [0, 0, 1, 1], [], []>} : vector<16x1024xbf16>, vector<1024x128xbf16>, vector<16x128xf32> -> vector<16x128xf32>
    %c0_3 = arith.constant 0 : index
    %c0_4 = arith.constant 0 : index
    %4 = vector.load %arg3[%c0_3, %c0_4] : memref<1x128xf32, #tpu.memory_space<vmem>>, vector<1x128xf32>
    %5 = vector.broadcast %4 : vector<1x128xf32> to vector<16x128xf32>
    %6 = arith.addf %3, %5 : vector<16x128xf32>
    %7 = math.tanh %6 : vector<16x128xf32>
    %8 = arith.truncf %7 : vector<16x128xf32> to vector<16x128xbf16>
    %c0_5 = arith.constant 0 : index
    %c0_6 = arith.constant 0 : index
    %9 = vector.load %arg4[%c0_5, %c0_6] : memref<128x64xbf16, #tpu.memory_space<vmem>>, vector<128x64xbf16>
    %cst_7 = arith.constant dense<0.000000e+00> : vector<16x64xf32>
    %10 = tpu.matmul %8, %9, %cst_7 {dimension_numbers = #tpu.dot_dimension_numbers<[1], [0], [0], [1], [0, 0, 1, 1], [], []>} : vector<16x128xbf16>, vector<128x64xbf16>, vector<16x64xf32> -> vector<16x64xf32>
    %c0_8 = arith.constant 0 : index
    %c0_9 = arith.constant 0 : index
    %11 = vector.load %arg5[%c0_8, %c0_9] : memref<1x64xf32, #tpu.memory_space<vmem>>, vector<1x64xf32>
    %12 = vector.broadcast %11 : vector<1x64xf32> to vector<16x64xf32>
    %13 = arith.addf %10, %12 : vector<16x64xf32>
    %14 = tpu.iota {dimensions = array<i32: 1>} : vector<16x64xi32>
    %c32_i32 = arith.constant 32 : i32
    %15 = vector.broadcast %c32_i32 : i32 to vector<16x64xi32>
    %16 = arith.cmpi sge, %14, %15 : vector<16x64xi32>
    %cst_10 = arith.constant 0.000000e+00 : f32
    %17 = vector.broadcast %cst_10 : f32 to vector<16x64xf32>
    %18 = arith.select %16, %13, %17 : vector<16x64xi1>, vector<16x64xf32>
    %19 = math.exp %18 : vector<16x64xf32>
    %cst_11 = arith.constant 1.000000e+00 : f32
    %20 = vector.broadcast %cst_11 : f32 to vector<16x64xf32>
    %21 = arith.addf %20, %13 : vector<16x64xf32>
    %22 = arith.subf %21, %19 : vector<16x64xf32>
    %23 = arith.mulf %13, %13 : vector<16x64xf32>
    %cst_12 = arith.constant 0.000000e+00 : f32
    %24 = vector.broadcast %cst_12 : f32 to vector<16x64xf32>
    %25 = arith.subf %24, %23 : vector<16x64xf32>
    %26 = arith.select %16, %22, %25 : vector<16x64xi1>, vector<16x64xf32>
    %cst_13 = arith.constant dense<0.000000e+00> : vector<16xf32>
    %27 = vector.multi_reduction <add>, %26, %cst_13 [1] : vector<16x64xf32> to vector<16xf32>
    %28 = vector.shape_cast %27 : vector<16xf32> to vector<16x1xf32>
    %cst_14 = arith.constant -5.000000e-01 : f32
    %29 = vector.broadcast %cst_14 : f32 to vector<16x1xf32>
    %30 = arith.mulf %29, %28 : vector<16x1xf32>
    %31 = arith.truncf %13 : vector<16x64xf32> to vector<16x64xbf16>
    %c0_15 = arith.constant 0 : index
    %c0_16 = arith.constant 0 : index
    %32 = vector.load %arg6[%c0_15, %c0_16] : memref<64x64xbf16, #tpu.memory_space<vmem>>, vector<64x64xbf16>
    %cst_17 = arith.constant dense<0.000000e+00> : vector<16x64xf32>
    %33 = tpu.matmul %31, %32, %cst_17 {dimension_numbers = #tpu.dot_dimension_numbers<[1], [0], [0], [1], [0, 0, 1, 1], [], []>} : vector<16x64xbf16>, vector<64x64xbf16>, vector<16x64xf32> -> vector<16x64xf32>
    %c0_18 = arith.constant 0 : index
    %c0_19 = arith.constant 0 : index
    %34 = vector.load %arg7[%c0_18, %c0_19] : memref<1x64xf32, #tpu.memory_space<vmem>>, vector<1x64xf32>
    %35 = vector.broadcast %34 : vector<1x64xf32> to vector<16x64xf32>
    %36 = arith.addf %33, %35 : vector<16x64xf32>
    %37 = math.tanh %36 : vector<16x64xf32>
    %38 = arith.truncf %37 : vector<16x64xf32> to vector<16x64xbf16>
    %c0_20 = arith.constant 0 : index
    %c0_21 = arith.constant 0 : index
    %39 = vector.load %arg8[%c0_20, %c0_21] : memref<64x1024xbf16, #tpu.memory_space<vmem>>, vector<64x1024xbf16>
    %cst_22 = arith.constant dense<0.000000e+00> : vector<16x1024xf32>
    %40 = tpu.matmul %38, %39, %cst_22 {dimension_numbers = #tpu.dot_dimension_numbers<[1], [0], [0], [1], [0, 0, 1, 1], [], []>} : vector<16x64xbf16>, vector<64x1024xbf16>, vector<16x1024xf32> -> vector<16x1024xf32>
    %c0_23 = arith.constant 0 : index
    %c0_24 = arith.constant 0 : index
    %41 = vector.load %arg9[%c0_23, %c0_24] : memref<1x1024xf32, #tpu.memory_space<vmem>>, vector<1x1024xf32>
    %42 = vector.broadcast %41 : vector<1x1024xf32> to vector<16x1024xf32>
    %43 = arith.addf %40, %42 : vector<16x1024xf32>
    %44 = arith.subf %0, %43 : vector<16x1024xf32>
    %45 = arith.mulf %44, %44 : vector<16x1024xf32>
    %cst_25 = arith.constant dense<0.000000e+00> : vector<16xf32>
    %46 = vector.multi_reduction <add>, %45, %cst_25 [1] : vector<16x1024xf32> to vector<16xf32>
    %47 = vector.shape_cast %46 : vector<16xf32> to vector<16x1xf32>
    %48 = arith.addf %47, %30 : vector<16x1xf32>
    %cst_26 = arith.constant 0.000000e+00 : f32
    %49 = vector.broadcast %cst_26 : f32 to vector<16x1xf32>
    %50 = arith.subf %49, %48 : vector<16x1xf32>
    %c0_27 = arith.constant 0 : index
    %c0_28 = arith.constant 0 : index
    %51 = vector.load %arg10[%c0_27, %c0_28] : memref<128x128xbf16, #tpu.memory_space<vmem>>, vector<128x128xbf16>
    %cst_29 = arith.constant dense<0.000000e+00> : vector<16x128xf32>
    %52 = tpu.matmul %8, %51, %cst_29 {dimension_numbers = #tpu.dot_dimension_numbers<[1], [0], [0], [1], [0, 0, 1, 1], [], []>} : vector<16x128xbf16>, vector<128x128xbf16>, vector<16x128xf32> -> vector<16x128xf32>
    %c0_30 = arith.constant 0 : index
    %c0_31 = arith.constant 0 : index
    %53 = vector.load %arg11[%c0_30, %c0_31] : memref<1x128xf32, #tpu.memory_space<vmem>>, vector<1x128xf32>
    %54 = vector.broadcast %53 : vector<1x128xf32> to vector<16x128xf32>
    %55 = arith.addf %52, %54 : vector<16x128xf32>
    %cst_32 = arith.constant dense<0xFF800000> : vector<16xf32>
    %56 = vector.multi_reduction <maximumf>, %55, %cst_32 [1] : vector<16x128xf32> to vector<16xf32>
    %57 = vector.shape_cast %56 : vector<16xf32> to vector<16x1xf32>
    %58 = vector.broadcast %57 : vector<16x1xf32> to vector<16x128xf32>
    %59 = arith.subf %55, %58 : vector<16x128xf32>
    %60 = math.exp %59 : vector<16x128xf32>
    %cst_33 = arith.constant dense<0.000000e+00> : vector<16xf32>
    %61 = vector.multi_reduction <add>, %60, %cst_33 [1] : vector<16x128xf32> to vector<16xf32>
    %62 = vector.shape_cast %61 : vector<16xf32> to vector<16x1xf32>
    %63 = math.log %62 : vector<16x1xf32>
    %64 = arith.addf %63, %57 : vector<16x1xf32>
    %65 = vector.broadcast %64 : vector<16x1xf32> to vector<16x128xf32>
    %66 = arith.subf %55, %65 : vector<16x128xf32>
    %c0_34 = arith.constant 0 : index
    %c0_35 = arith.constant 0 : index
    %67 = vector.load %arg1[%c0_34, %c0_35] : memref<16x1xi32, #tpu.memory_space<vmem>>, vector<16x1xi32>
    %68 = tpu.iota {dimensions = array<i32: 1>} : vector<16x128xi32>
    %69 = vector.broadcast %67 : vector<16x1xi32> to vector<16x128xi32>
    %70 = arith.cmpi eq, %68, %69 : vector<16x128xi32>
    %cst_36 = arith.constant 0.000000e+00 : f32
    %71 = vector.broadcast %cst_36 : f32 to vector<16x128xf32>
    %72 = arith.select %70, %66, %71 : vector<16x128xi1>, vector<16x128xf32>
    %cst_37 = arith.constant dense<0.000000e+00> : vector<16xf32>
    %73 = vector.multi_reduction <add>, %72, %cst_37 [1] : vector<16x128xf32> to vector<16xf32>
    %74 = vector.shape_cast %73 : vector<16xf32> to vector<16x1xf32>
    %cst_38 = arith.constant 0.000000e+00 : f32
    %75 = vector.broadcast %cst_38 : f32 to vector<16x1xf32>
    %76 = arith.subf %75, %74 : vector<16x1xf32>
    %cst_39 = arith.constant 0.000000e+00 : f32
    %77 = vector.broadcast %cst_39 : f32 to vector<16x128xf32>
    %78 = arith.select %70, %55, %77 : vector<16x128xi1>, vector<16x128xf32>
    %cst_40 = arith.constant dense<0.000000e+00> : vector<16xf32>
    %79 = vector.multi_reduction <add>, %78, %cst_40 [1] : vector<16x128xf32> to vector<16xf32>
    %80 = vector.shape_cast %79 : vector<16xf32> to vector<16x1xf32>
    %81 = arith.cmpf oge, %80, %57 : vector<16x1xf32>
    %82 = arith.extui %81 : vector<16x1xi1> to vector<16x1xi32>
    %83 = arith.sitofp %82 : vector<16x1xi32> to vector<16x1xf32>
    %84 = tpu.iota {dimensions = array<i32: 0>} : vector<16x1xi32>
    %c0_i32 = arith.constant 0 : i32
    %85 = vector.broadcast %c0_i32 : i32 to vector<16x1xi32>
    %86 = arith.cmpi sge, %84, %85 : vector<16x1xi32>
    %c4_i32 = arith.constant 4 : i32
    %87 = vector.broadcast %c4_i32 : i32 to vector<16x1xi32>
    %88 = arith.cmpi slt, %84, %87 : vector<16x1xi32>
    %89 = arith.andi %86, %88 : vector<16x1xi1>
    %cst_41 = arith.constant 0.000000e+00 : f32
    %90 = vector.broadcast %cst_41 : f32 to vector<16x1xf32>
    %91 = arith.select %89, %50, %90 : vector<16x1xi1>, vector<16x1xf32>
    %92 = vector.shape_cast %91 : vector<16x1xf32> to vector<1x16x1xf32>
    %cst_42 = arith.constant dense<0.000000e+00> : vector<1xf32>
    %93 = vector.multi_reduction <add>, %92, %cst_42 [1, 2] : vector<1x16x1xf32> to vector<1xf32>
    %94 = vector.shape_cast %93 : vector<1xf32> to vector<1x1x1xf32>
    %95 = vector.extract %94[0, 0, 0] : f32 from vector<1x1x1xf32>
    %cst_43 = arith.constant 2.500000e-01 : f32
    %96 = arith.mulf %95, %cst_43 : f32
    %c0_44 = arith.constant 0 : index
    %97 = memref.load %arg12[%c0_44] : memref<8xf32, #tpu.memory_space<smem>>
    memref.store %96, %arg12[%c0_44] : memref<8xf32, #tpu.memory_space<smem>>
    %c4_i32_45 = arith.constant 4 : i32
    %98 = vector.broadcast %c4_i32_45 : i32 to vector<16x1xi32>
    %99 = arith.cmpi sge, %84, %98 : vector<16x1xi32>
    %c8_i32 = arith.constant 8 : i32
    %100 = vector.broadcast %c8_i32 : i32 to vector<16x1xi32>
    %101 = arith.cmpi slt, %84, %100 : vector<16x1xi32>
    %102 = arith.andi %99, %101 : vector<16x1xi1>
    %cst_46 = arith.constant 0.000000e+00 : f32
    %103 = vector.broadcast %cst_46 : f32 to vector<16x1xf32>
    %104 = arith.select %102, %50, %103 : vector<16x1xi1>, vector<16x1xf32>
    %105 = vector.shape_cast %104 : vector<16x1xf32> to vector<1x16x1xf32>
    %cst_47 = arith.constant dense<0.000000e+00> : vector<1xf32>
    %106 = vector.multi_reduction <add>, %105, %cst_47 [1, 2] : vector<1x16x1xf32> to vector<1xf32>
    %107 = vector.shape_cast %106 : vector<1xf32> to vector<1x1x1xf32>
    %108 = vector.extract %107[0, 0, 0] : f32 from vector<1x1x1xf32>
    %cst_48 = arith.constant 2.500000e-01 : f32
    %109 = arith.mulf %108, %cst_48 : f32
    %c1 = arith.constant 1 : index
    %110 = memref.load %arg12[%c1] : memref<8xf32, #tpu.memory_space<smem>>
    memref.store %109, %arg12[%c1] : memref<8xf32, #tpu.memory_space<smem>>
    %c8_i32_49 = arith.constant 8 : i32
    %111 = vector.broadcast %c8_i32_49 : i32 to vector<16x1xi32>
    %112 = arith.cmpi sge, %84, %111 : vector<16x1xi32>
    %c12_i32 = arith.constant 12 : i32
    %113 = vector.broadcast %c12_i32 : i32 to vector<16x1xi32>
    %114 = arith.cmpi slt, %84, %113 : vector<16x1xi32>
    %115 = arith.andi %112, %114 : vector<16x1xi1>
    %cst_50 = arith.constant 0.000000e+00 : f32
    %116 = vector.broadcast %cst_50 : f32 to vector<16x1xf32>
    %117 = arith.select %115, %50, %116 : vector<16x1xi1>, vector<16x1xf32>
    %118 = vector.shape_cast %117 : vector<16x1xf32> to vector<1x16x1xf32>
    %cst_51 = arith.constant dense<0.000000e+00> : vector<1xf32>
    %119 = vector.multi_reduction <add>, %118, %cst_51 [1, 2] : vector<1x16x1xf32> to vector<1xf32>
    %120 = vector.shape_cast %119 : vector<1xf32> to vector<1x1x1xf32>
    %121 = vector.extract %120[0, 0, 0] : f32 from vector<1x1x1xf32>
    %cst_52 = arith.constant 2.500000e-01 : f32
    %122 = arith.mulf %121, %cst_52 : f32
    %c2 = arith.constant 2 : index
    %123 = memref.load %arg12[%c2] : memref<8xf32, #tpu.memory_space<smem>>
    memref.store %122, %arg12[%c2] : memref<8xf32, #tpu.memory_space<smem>>
    %c12_i32_53 = arith.constant 12 : i32
    %124 = vector.broadcast %c12_i32_53 : i32 to vector<16x1xi32>
    %125 = arith.cmpi sge, %84, %124 : vector<16x1xi32>
    %c16_i32 = arith.constant 16 : i32
    %126 = vector.broadcast %c16_i32 : i32 to vector<16x1xi32>
    %127 = arith.cmpi slt, %84, %126 : vector<16x1xi32>
    %128 = arith.andi %125, %127 : vector<16x1xi1>
    %cst_54 = arith.constant 0.000000e+00 : f32
    %129 = vector.broadcast %cst_54 : f32 to vector<16x1xf32>
    %130 = arith.select %128, %50, %129 : vector<16x1xi1>, vector<16x1xf32>
    %131 = vector.shape_cast %130 : vector<16x1xf32> to vector<1x16x1xf32>
    %cst_55 = arith.constant dense<0.000000e+00> : vector<1xf32>
    %132 = vector.multi_reduction <add>, %131, %cst_55 [1, 2] : vector<1x16x1xf32> to vector<1xf32>
    %133 = vector.shape_cast %132 : vector<1xf32> to vector<1x1x1xf32>
    %134 = vector.extract %133[0, 0, 0] : f32 from vector<1x1x1xf32>
    %cst_56 = arith.constant 2.500000e-01 : f32
    %135 = arith.mulf %134, %cst_56 : f32
    %c3 = arith.constant 3 : index
    %136 = memref.load %arg12[%c3] : memref<8xf32, #tpu.memory_space<smem>>
    memref.store %135, %arg12[%c3] : memref<8xf32, #tpu.memory_space<smem>>
    %c0_i32_57 = arith.constant 0 : i32
    %137 = vector.broadcast %c0_i32_57 : i32 to vector<16x1xi32>
    %138 = arith.cmpi sge, %84, %137 : vector<16x1xi32>
    %c4_i32_58 = arith.constant 4 : i32
    %139 = vector.broadcast %c4_i32_58 : i32 to vector<16x1xi32>
    %140 = arith.cmpi slt, %84, %139 : vector<16x1xi32>
    %141 = arith.andi %138, %140 : vector<16x1xi1>
    %cst_59 = arith.constant 0.000000e+00 : f32
    %142 = vector.broadcast %cst_59 : f32 to vector<16x1xf32>
    %143 = arith.select %141, %76, %142 : vector<16x1xi1>, vector<16x1xf32>
    %144 = vector.shape_cast %143 : vector<16x1xf32> to vector<1x16x1xf32>
    %cst_60 = arith.constant dense<0.000000e+00> : vector<1xf32>
    %145 = vector.multi_reduction <add>, %144, %cst_60 [1, 2] : vector<1x16x1xf32> to vector<1xf32>
    %146 = vector.shape_cast %145 : vector<1xf32> to vector<1x1x1xf32>
    %147 = vector.extract %146[0, 0, 0] : f32 from vector<1x1x1xf32>
    %cst_61 = arith.constant 2.500000e-01 : f32
    %148 = arith.mulf %147, %cst_61 : f32
    %c4 = arith.constant 4 : index
    %149 = memref.load %arg12[%c4] : memref<8xf32, #tpu.memory_space<smem>>
    memref.store %148, %arg12[%c4] : memref<8xf32, #tpu.memory_space<smem>>
    %c8_i32_62 = arith.constant 8 : i32
    %150 = vector.broadcast %c8_i32_62 : i32 to vector<16x1xi32>
    %151 = arith.cmpi sge, %84, %150 : vector<16x1xi32>
    %c12_i32_63 = arith.constant 12 : i32
    %152 = vector.broadcast %c12_i32_63 : i32 to vector<16x1xi32>
    %153 = arith.cmpi slt, %84, %152 : vector<16x1xi32>
    %154 = arith.andi %151, %153 : vector<16x1xi1>
    %cst_64 = arith.constant 0.000000e+00 : f32
    %155 = vector.broadcast %cst_64 : f32 to vector<16x1xf32>
    %156 = arith.select %154, %76, %155 : vector<16x1xi1>, vector<16x1xf32>
    %157 = vector.shape_cast %156 : vector<16x1xf32> to vector<1x16x1xf32>
    %cst_65 = arith.constant dense<0.000000e+00> : vector<1xf32>
    %158 = vector.multi_reduction <add>, %157, %cst_65 [1, 2] : vector<1x16x1xf32> to vector<1xf32>
    %159 = vector.shape_cast %158 : vector<1xf32> to vector<1x1x1xf32>
    %160 = vector.extract %159[0, 0, 0] : f32 from vector<1x1x1xf32>
    %cst_66 = arith.constant 2.500000e-01 : f32
    %161 = arith.mulf %160, %cst_66 : f32
    %c5 = arith.constant 5 : index
    %162 = memref.load %arg12[%c5] : memref<8xf32, #tpu.memory_space<smem>>
    memref.store %161, %arg12[%c5] : memref<8xf32, #tpu.memory_space<smem>>
    %c8_i32_67 = arith.constant 8 : i32
    %163 = vector.broadcast %c8_i32_67 : i32 to vector<16x1xi32>
    %164 = arith.cmpi sge, %84, %163 : vector<16x1xi32>
    %cst_68 = arith.constant 0.000000e+00 : f32
    %165 = vector.broadcast %cst_68 : f32 to vector<16x1xf32>
    %166 = arith.select %164, %83, %165 : vector<16x1xi1>, vector<16x1xf32>
    %167 = vector.shape_cast %166 : vector<16x1xf32> to vector<1x16x1xf32>
    %cst_69 = arith.constant dense<0.000000e+00> : vector<1xf32>
    %168 = vector.multi_reduction <add>, %167, %cst_69 [1, 2] : vector<1x16x1xf32> to vector<1xf32>
    %169 = vector.shape_cast %168 : vector<1xf32> to vector<1x1x1xf32>
    %170 = vector.extract %169[0, 0, 0] : f32 from vector<1x1x1xf32>
    %cst_70 = arith.constant 1.250000e-01 : f32
    %171 = arith.mulf %170, %cst_70 : f32
    %c6 = arith.constant 6 : index
    %172 = memref.load %arg12[%c6] : memref<8xf32, #tpu.memory_space<smem>>
    memref.store %171, %arg12[%c6] : memref<8xf32, #tpu.memory_space<smem>>
    %cst_71 = arith.constant 0.000000e+00 : f32
    %c7 = arith.constant 7 : index
    %173 = memref.load %arg12[%c7] : memref<8xf32, #tpu.memory_space<smem>>
    memref.store %cst_71, %arg12[%c7] : memref<8xf32, #tpu.memory_space<smem>>
    return
  }
}

</mosaic_0001>

<bundles_post_ra>
// kernel: trainer_forward_step.1
= control target key start
LH: loop header
LB: loop body
LE: loop exit
PB: predicated region body
PF: predicated region fallthrough
CT: control target
= control target key end

     0   :  { %s2917_s0 = inlined_call_operand.vmem [shape: f32[16,1024], index: 0, kind: input, shape index: {}]   ;;  %s2918_s1 = inlined_call_operand.vmem [shape: s32[16,1], index: 1, kind: input, shape index: {}]   ;;  %s2919_s2 = inlined_call_operand.vmem [shape: bf16[1024,128], index: 2, kind: input, shape index: {}]   ;;  %s2920_s3 = inlined_call_operand.vmem [shape: f32[1,128], index: 3, kind: input, shape index: {}]   ;;  %s2921_s4 = inlined_call_operand.vmem [shape: bf16[128,64], index: 4, kind: input, shape index: {}]   ;;  %s2922_s5 = inlined_call_operand.vmem [shape: f32[1,64], index: 5, kind: input, shape index: {}]   ;;  %s2923_s6 = inlined_call_operand.vmem [shape: bf16[64,64], index: 6, kind: input, shape index: {}]   ;;  %s2924_s7 = inlined_call_operand.vmem [shape: f32[1,64], index: 7, kind: input, shape index: {}]   ;;  %s2925_s8 = inlined_call_operand.vmem [shape: bf16[64,1024], index: 8, kind: input, shape index: {}]   ;;  %s2926_s9 = inlined_call_operand.vmem [shape: f32[1,1024], index: 9, kind: input, shape index: {}]   ;;  %s2927_s10 = inlined_call_operand.vmem [shape: bf16[128,128], index: 10, kind: input, shape index: {}]   ;;  %s2928_s11 = inlined_call_operand.vmem [shape: f32[1,128], index: 11, kind: input, shape index: {}]   ;;  %s2929_s12 = inlined_call_operand.vmem [shape: f32[8], index: 12, kind: output, shape index: {}]  }
   0x1   :  { %v2024_v0 = vld [vmem:[%s2919_s2 + $0x38] sm:$0xff]  ;;  %v2023_v4 = vld [vmem:[%s2919_s2 + $0x30] sm:$0xff]  ;;  %v2022_v8 = vld [vmem:[%s2919_s2 + $0x28] sm:$0xff] }
   0x2   :  { %v2032_v1 = vld [vmem:[%s2919_s2 + $0x78] sm:$0xff]  ;;  %583 = vmatpush.bf16.msra.mxu0 %v2024_v0  ;;  %v2031_v5 = vld [vmem:[%s2919_s2 + $0x70] sm:$0xff]  ;;  %v2030_v9 = vld [vmem:[%s2919_s2 + $0x68] sm:$0xff] }
   0x3   :  { %v2040_v2 = vld [vmem:[%s2919_s2 + $0xb8] sm:$0xff]  ;;  %597 = vmatpush.bf16.msra.mxu1 %v2032_v1  ;;  %v2039_v6 = vld [vmem:[%s2919_s2 + $0xb0] sm:$0xff]  ;;  %v2038_v10 = vld [vmem:[%s2919_s2 + $0xa8] sm:$0xff] }
   0x4   :  { %v2048_v3 = vld [vmem:[%s2919_s2 + $0xf8] sm:$0xff]  ;;  %611 = vmatpush.bf16.msra.mxu2 %v2040_v2  ;;  %v2047_v7 = vld [vmem:[%s2919_s2 + $0xf0] sm:$0xff]  ;;  %v2046_v11 = vld [vmem:[%s2919_s2 + $0xe8] sm:$0xff] }
   0x5   :  { %625 = vmatpush.bf16.msra.mxu3 %v2048_v3  ;;  %v2021_v12 = vld [vmem:[%s2919_s2 + $0x20] sm:$0xff]  ;;  %v2020_v16 = vld [vmem:[%s2919_s2 + $0x18] sm:$0xff]  ;;  %v2019_v20 = vld [vmem:[%s2919_s2 + $0x10] sm:$0xff] }
   0x6   :  { %584 = vmatpush.bf16.msra.mxu0 %v2023_v4  ;;  %v2029_v13 = vld [vmem:[%s2919_s2 + $0x60] sm:$0xff]  ;;  %v2028_v17 = vld [vmem:[%s2919_s2 + $0x58] sm:$0xff]  ;;  %v2027_v21 = vld [vmem:[%s2919_s2 + $0x50] sm:$0xff] }
   0x7   :  { %598 = vmatpush.bf16.msra.mxu1 %v2031_v5  ;;  %v2037_v14 = vld [vmem:[%s2919_s2 + $0xa0] sm:$0xff]  ;;  %v2036_v18 = vld [vmem:[%s2919_s2 + $0x98] sm:$0xff]  ;;  %v2035_v22 = vld [vmem:[%s2919_s2 + $0x90] sm:$0xff] }
   0x8   :  { %612 = vmatpush.bf16.msra.mxu2 %v2039_v6  ;;  %v2045_v15 = vld [vmem:[%s2919_s2 + $0xe0] sm:$0xff]  ;;  %v2044_v19 = vld [vmem:[%s2919_s2 + $0xd8] sm:$0xff]  ;;  %v2043_v23 = vld [vmem:[%s2919_s2 + $0xd0] sm:$0xff] }
   0x9   :  { %626 = vmatpush.bf16.msra.mxu3 %v2047_v7  ;;  %v2018_v24 = vld [vmem:[%s2919_s2 + $0x8] sm:$0xff]  ;;  %v2017_v28 = vld [vmem:[%s2919_s2] sm:$0xff] }
   0xa   :  { %585 = vmatpush.bf16.msra.mxu0 %v2022_v8  ;;  %v2026_v25 = vld [vmem:[%s2919_s2 + $0x48] sm:$0xff] }
   0xb   :  { %599 = vmatpush.bf16.msra.mxu1 %v2030_v9  ;;  %v2034_v26 = vld [vmem:[%s2919_s2 + $0x88] sm:$0xff] }
   0xc   :  { %613 = vmatpush.bf16.msra.mxu2 %v2038_v10  ;;  %v2042_v27 = vld [vmem:[%s2919_s2 + $0xc8] sm:$0xff] }
   0xd   :  { %627 = vmatpush.bf16.msra.mxu3 %v2046_v11 }
   0xe   :  { %586 = vmatpush.bf16.msra.mxu0 %v2021_v12 }
   0xf   :  { %600 = vmatpush.bf16.msra.mxu1 %v2029_v13 }
  0x10   :  { %614 = vmatpush.bf16.msra.mxu2 %v2037_v14 }
  0x11   :  { %628 = vmatpush.bf16.msra.mxu3 %v2045_v15 }
  0x12   :  { %587 = vmatpush.bf16.msra.mxu0 %v2020_v16 }
  0x13   :  { %601 = vmatpush.bf16.msra.mxu1 %v2028_v17 }
  0x14   :  { %615 = vmatpush.bf16.msra.mxu2 %v2036_v18 }
  0x15   :  { %629 = vmatpush.bf16.msra.mxu3 %v2044_v19 }
  0x16   :  { %588 = vmatpush.bf16.msra.mxu0 %v2019_v20 }
  0x17   :  { %602 = vmatpush.bf16.msra.mxu1 %v2027_v21 }
  0x18   :  { %616 = vmatpush.bf16.msra.mxu2 %v2035_v22 }
  0x19   :  { %630 = vmatpush.bf16.msra.mxu3 %v2043_v23 }
  0x1a   :  { %17 = vsyncpa [#allocation3], 0  ;;  %v2025_v29 = vld [vmem:[%s2919_s2 + $0x40] sm:$0xff]  ;;  %589 = vmatpush.bf16.msra.mxu0 %v2018_v24  ;;  %v2056_v32 = vld [vmem:[%s2919_s2 + $0x138] sm:$0xff]  ;;  %vm799_vm0 = vcmask 523264   ;;  %vm1389_vm6 = vcmask 7168  }
  0x1b   :  { %v2033_v30 = vld [vmem:[%s2919_s2 + $0x80] sm:$0xff]  ;;  %603 = vmatpush.bf16.msra.mxu1 %v2026_v25  ;;  %v2064_v33 = vld [vmem:[%s2919_s2 + $0x178] sm:$0xff]  ;;  %v2365_v34 = vld [vmem:[%s2917_s0 + $0x10] sm:$0xff]  ;;  %s2194_s20 = smov [#allocation2]  }
  0x1c   :  { %v2041_v31 = vld [vmem:[%s2919_s2 + $0xc0] sm:$0xff]  ;;  %v2370_v35 = vld [vmem:[%s2917_s0 + $0x50] sm:$0xff]  ;;  %617 = vmatpush.bf16.msra.mxu2 %v2034_v26  ;;  %v2385_v38 = vld [vmem:[%s2917_s0 + $0x18] sm:$0xff] }
  0x1d   :  { %631 = vmatpush.bf16.msra.mxu3 %v2042_v27  ;;  %v2375_v36 = vld [vmem:[%s2917_s0] sm:$0xff]  ;;  %v2390_v39 = vld [vmem:[%s2917_s0 + $0x58] sm:$0xff]  ;;  %v2395_v40 = vld [vmem:[%s2917_s0 + $0x8] sm:$0xff]  ;;  %v61_v44 = vpack.c.bf16 %v2370_v35, %v2365_v34 }
  0x1e   :  { %v2380_v37 = vld [vmem:[%s2917_s0 + $0x40] sm:$0xff]  ;;  %v2400_v41 = vld [vmem:[%s2917_s0 + $0x48] sm:$0xff]  ;;  %v2072_v42 = vld [vmem:[%s2919_s2 + $0x1b8] sm:$0xff]  ;;  %590 = vmatpush.bf16.msra.mxu0 %v2017_v28  ;;  %v62_v46 = vpack.c.bf16 %v2390_v39, %v2385_v38 }
  0x1f   :  { %v2080_v43 = vld [vmem:[%s2919_s2 + $0x1f8] sm:$0xff]  ;;  %604 = vmatpush.bf16.msra.mxu1 %v2025_v29  ;;  %v59_v45 = vpack.c.bf16 %v2380_v37, %v2375_v36  ;;  %v60_v47 = vpack.c.bf16 %v2400_v41, %v2395_v40  ;;  %v2055_v48 = vld [vmem:[%s2919_s2 + $0x130] sm:$0xff]  ;;  %v2054_v52 = vld [vmem:[%s2919_s2 + $0x128] sm:$0xff] }
  0x20   :  { %618 = vmatpush.bf16.msra.mxu2 %v2033_v30  ;;  %v2063_v49 = vld [vmem:[%s2919_s2 + $0x170] sm:$0xff]  ;;  %v2062_v53 = vld [vmem:[%s2919_s2 + $0x168] sm:$0xff]  ;;  %v2053_v56 = vld [vmem:[%s2919_s2 + $0x120] sm:$0xff] }
  0x21   :  { %632 = vmatpush.bf16.msra.mxu3 %v2041_v31  ;;  %v2071_v50 = vld [vmem:[%s2919_s2 + $0x1b0] sm:$0xff]  ;;  %591 = vmatmul.bf16.vlgmr.msra.gmra.mxu0 %v59_v45  ;;  %v2070_v54 = vld [vmem:[%s2919_s2 + $0x1a8] sm:$0xff]  ;;  %v2061_v57 = vld [vmem:[%s2919_s2 + $0x160] sm:$0xff] }
  0x22   :  { %639 = vmatpush.bf16.msrb.mxu0 %v2056_v32  ;;  %v2079_v51 = vld [vmem:[%s2919_s2 + $0x1f0] sm:$0xff]  ;;  %605 = vmatmul.bf16.vlgmr.msra.gmra.mxu1 %v60_v47  ;;  %v2078_v55 = vld [vmem:[%s2919_s2 + $0x1e8] sm:$0xff]  ;;  %v2069_v58 = vld [vmem:[%s2919_s2 + $0x1a0] sm:$0xff] }
  0x23   :  { %653 = vmatpush.bf16.msrb.mxu1 %v2064_v33  ;;  %619 = vmatmul.bf16.vlgmr.msra.gmra.mxu2 %v61_v44  ;;  %v2077_v59 = vld [vmem:[%s2919_s2 + $0x1e0] sm:$0xff]  ;;  %v2052_v60 = vld [vmem:[%s2919_s2 + $0x118] sm:$0xff]  ;;  %v2051_v0 = vld [vmem:[%s2919_s2 + $0x110] sm:$0xff] }
  0x24   :  { %667 = vmatpush.bf16.msrb.mxu2 %v2072_v42  ;;  %633 = vmatmul.bf16.vlgmr.msra.gmra.mxu3 %v62_v46  ;;  %v2060_v61 = vld [vmem:[%s2919_s2 + $0x158] sm:$0xff]  ;;  %v2059_v1 = vld [vmem:[%s2919_s2 + $0x150] sm:$0xff]  ;;  %v2050_v4 = vld [vmem:[%s2919_s2 + $0x108] sm:$0xff] }
  0x25   :  { %681 = vmatpush.bf16.msrb.mxu3 %v2080_v43  ;;  %v2068_v62 = vld [vmem:[%s2919_s2 + $0x198] sm:$0xff]  ;;  %v2067_v2 = vld [vmem:[%s2919_s2 + $0x190] sm:$0xff]  ;;  %v2058_v5 = vld [vmem:[%s2919_s2 + $0x148] sm:$0xff] }
  0x26   :  { %640 = vmatpush.bf16.msrb.mxu0 %v2055_v48  ;;  %v2076_v63 = vld [vmem:[%s2919_s2 + $0x1d8] sm:$0xff]  ;;  %v2075_v3 = vld [vmem:[%s2919_s2 + $0x1d0] sm:$0xff]  ;;  %v2066_v6 = vld [vmem:[%s2919_s2 + $0x188] sm:$0xff] }
  0x27   :  { %654 = vmatpush.bf16.msrb.mxu1 %v2063_v49  ;;  %v2074_v7 = vld [vmem:[%s2919_s2 + $0x1c8] sm:$0xff]  ;;  %v2049_v8 = vld [vmem:[%s2919_s2 + $0x100] sm:$0xff]  ;;  %v2523_v16 = vld [vmem:[%s2917_s0 + $0x30] sm:$0xff] }
  0x28   :  { %668 = vmatpush.bf16.msrb.mxu2 %v2071_v50  ;;  %v2057_v9 = vld [vmem:[%s2919_s2 + $0x140] sm:$0xff]  ;;  %v2513_v14 = vld [vmem:[%s2917_s0 + $0x28] sm:$0xff]  ;;  %v2528_v17 = vld [vmem:[%s2917_s0 + $0x70] sm:$0xff] }
  0x29   :  { %682 = vmatpush.bf16.msrb.mxu3 %v2079_v51  ;;  %v2065_v10 = vld [vmem:[%s2919_s2 + $0x180] sm:$0xff]  ;;  %v2518_v15 = vld [vmem:[%s2917_s0 + $0x68] sm:$0xff]  ;;  %v2533_v18 = vld [vmem:[%s2917_s0 + $0x38] sm:$0xff]  ;;  %v65_v22 = vpack.c.bf16 %v2528_v17, %v2523_v16 }
  0x2a   :  { %641 = vmatpush.bf16.msrb.mxu0 %v2054_v52  ;;  %v2073_v11 = vld [vmem:[%s2919_s2 + $0x1c0] sm:$0xff]  ;;  %v2538_v19 = vld [vmem:[%s2917_s0 + $0x78] sm:$0xff]  ;;  %v64_v21 = vpack.c.bf16 %v2518_v15, %v2513_v14  ;;  %v2087_v25 = vld [vmem:[%s2921_s4 + $0x30] sm:$0xff] }
  0x2b   :  { %655 = vmatpush.bf16.msrb.mxu1 %v2062_v53  ;;  %v2503_v12 = vld [vmem:[%s2917_s0 + $0x20] sm:$0xff]  ;;  %v66_v23 = vpack.c.bf16 %v2538_v19, %v2533_v18  ;;  %v2088_v24 = vld [vmem:[%s2921_s4 + $0x38] sm:$0xff]  ;;  %v2086_v26 = vld [vmem:[%s2921_s4 + $0x28] sm:$0xff] }
  0x2c   :  { %669 = vmatpush.bf16.msrb.mxu2 %v2070_v54  ;;  %v2508_v13 = vld [vmem:[%s2917_s0 + $0x60] sm:$0xff]  ;;  %v2084_v28 = vld [vmem:[%s2921_s4 + $0x18] sm:$0xff]  ;;  %v2083_v30 = vld [vmem:[%s2921_s4 + $0x10] sm:$0xff] }
  0x2d   :  { %683 = vmatpush.bf16.msrb.mxu3 %v2078_v55  ;;  %v63_v20 = vpack.c.bf16 %v2508_v13, %v2503_v12  ;;  %v2085_v27 = vld [vmem:[%s2921_s4 + $0x20] sm:$0xff]  ;;  %v2082_v33 = vld [vmem:[%s2921_s4 + $0x8] sm:$0xff]  ;;  %v2092_v50 = vld [vmem:[%s2923_s6 + $0x18] sm:$0xff] }
  0x2e   :  { %642 = vmatpush.bf16.msrb.mxu0 %v2053_v56  ;;  %v2153_v32 = vld [vmem:[%s2920_s3] ss:$0 sm:$0xff]  ;;  %s1532_s3 = sshll.u32 %s2929_s12, 4  ;;  %s1533_s3 = int_to_ptr.vmem [resolvable:$true] %s1532_s3 }
  0x2f   :  { %656 = vmatpush.bf16.msrb.mxu1 %v2061_v57  ;;  %v2081_v44 = vld [vmem:[%s2921_s4] sm:$0xff] }
  0x30   :  { %670 = vmatpush.bf16.msrb.mxu2 %v2069_v58 }
  0x31   :  { %684 = vmatpush.bf16.msrb.mxu3 %v2077_v59 }
  0x32   :  { %643 = vmatpush.bf16.msrb.mxu0 %v2052_v60 }
  0x33   :  { %657 = vmatpush.bf16.msrb.mxu1 %v2060_v61 }
  0x34   :  { %671 = vmatpush.bf16.msrb.mxu2 %v2068_v62 }
  0x35   :  { %685 = vmatpush.bf16.msrb.mxu3 %v2076_v63 }
  0x36   :  { %644 = vmatpush.bf16.msrb.mxu0 %v2051_v0 }
  0x37   :  { %658 = vmatpush.bf16.msrb.mxu1 %v2059_v1 }
  0x38   :  { %672 = vmatpush.bf16.msrb.mxu2 %v2067_v2 }
  0x39   :  { %686 = vmatpush.bf16.msrb.mxu3 %v2075_v3 }
  0x3a   :  { %645 = vmatpush.bf16.msrb.mxu0 %v2050_v4 }
  0x3b   :  { %659 = vmatpush.bf16.msrb.mxu1 %v2058_v5 }
  0x3c   :  { %673 = vmatpush.bf16.msrb.mxu2 %v2066_v6 }
  0x3d   :  { %687 = vmatpush.bf16.msrb.mxu3 %v2074_v7 }
  0x3e   :  { %646 = vmatpush.bf16.msrb.mxu0 %v2049_v8 }
  0x3f   :  { %660 = vmatpush.bf16.msrb.mxu1 %v2057_v9 }
  0x40   :  { %674 = vmatpush.bf16.msrb.mxu2 %v2065_v10 }
  0x41   :  { %688 = vmatpush.bf16.msrb.mxu3 %v2073_v11  ;;  %647 = vmatmul.bf16.vlgmr.msrb.gmra.mxu0 %v63_v20 }
  0x42   :  { %661 = vmatmul.bf16.vlgmr.msrb.gmra.mxu1 %v64_v21  ;;  %766 = vmatpush.bf16.msra.mxu0 %v2088_v24  ;;  %v2091_v21 = vld [vmem:[%s2923_s6 + $0x10] sm:$0xff]  ;;  %v2117_v24 = vld [vmem:[%s2925_s8 + $0xc4] sm:$0xf] }
  0x43   :  { %675 = vmatmul.bf16.vlgmr.msrb.gmra.mxu2 %v65_v22  ;;  %852 = vmatpush.bf16.msra.mxu1 %v2092_v50  ;;  %v2090_v22 = vld [vmem:[%s2923_s6 + $0x8] sm:$0xff] }
  0x44   :  { %689 = vmatmul.bf16.vlgmr.msrb.gmra.mxu3 %v66_v23  ;;  %v2089_v23 = vld [vmem:[%s2923_s6] sm:$0xff] }
  0x46   :  { %767 = vmatpush.bf16.msra.mxu0 %v2087_v25  ;;  %v1947_v25 = vld [vmem:[%s2925_s8 + $0xe0] sm:$0xf0] }
  0x47   :  { %853 = vmatpush.bf16.msra.mxu1 %v2091_v21  ;;  %v2114_v21 = vld [vmem:[%s2925_s8 + $0xa4] sm:$0xf0] }
  0x4a   :  { %768 = vmatpush.bf16.msra.mxu0 %v2086_v26  ;;  %v2109_v26 = vld [vmem:[%s2925_s8 + $0x84] sm:$0xf] }
  0x4b   :  { %854 = vmatpush.bf16.msra.mxu1 %v2090_v22  ;;  %v2111_v22 = vld [vmem:[%s2925_s8 + $0x94] sm:$0xf] }
  0x4e   :  { %769 = vmatpush.bf16.msra.mxu0 %v2085_v27  ;;  %v1950_v27 = vor.u32 %v2117_v24, %v1947_v25 }
  0x4f   :  { %855 = vmatpush.bf16.msra.mxu1 %v2089_v23  ;;  %v1931_v23 = vld [vmem:[%s2925_s8 + $0xb0] sm:$0xf0] }
  0x50   :  { %1096 = vmatpush.bf16.msra.mxu3 %v1950_v27  ;;  %v1934_v25 = vor.u32 %v2111_v22, %v1931_v23  ;;  %v2115_v27 = vld [vmem:[%s2925_s8 + $0xac] sm:$0xf0]  ;;  %v2102_v22 = vld [vmem:[%s2925_s8 + $0x4c] sm:$0xf] }
  0x51   :  { %v1891_v23 = vld [vmem:[%s2925_s8 + $0x68] sm:$0xf0] }
  0x52   :  { %770 = vmatpush.bf16.msra.mxu0 %v2084_v28  ;;  %v1915_v28 = vld [vmem:[%s2925_s8 + $0xa0] sm:$0xf0] }
  0x56   :  { %771 = vmatpush.bf16.msra.mxu0 %v2083_v30 }
  0x5a   :  { %772 = vmatpush.bf16.msra.mxu0 %v2082_v33 }
  0x5e   :  { %773 = vmatpush.bf16.msra.mxu0 %v2081_v44 }
  0x9e   :  { %v592_v29 = vpop.f32.mrf.mxu0 }
  0x9f   :  { %v606_v31 = vpop.f32.mrf.mxu1  ;;  %v593_v45 = vadd.f32 %v2153_v32, %v592_v29  ;;  %v1918_v29 = vor.u32 %v2109_v26, %v1915_v28  ;;  %v1929_v26 = vld [vmem:[%s2925_s8 + $0x90] sm:$0xf] }
  0xa0   :  { %v1930_v28 = vor.u32 %v2115_v27, %v1929_v26  ;;  %v2108_v26 = vld [vmem:[%s2925_s8 + $0x74] sm:$0xf0] }
  0xa1   :  { %v607_v47 = vadd.f32 %v606_v31, %v593_v45  ;;  %1097 = vmatpush.bf16.msra.mxu3 %v1918_v29  ;;  %v780_v31 = vlaneseq  ;;  %v1881_v29 = vld [vmem:[%s2925_s8 + $0x40] sm:$0xf] }
  0xa3   :  { %v2606_v33 = vand.u32 127, %v780_v31 }
  0xa5   :  { %vm782_vm1 = vcmp.ge.s32.totalorder %v2606_v33, 32 }
  0xa6   :  { %v620_v42 = vpop.f32.mrf.mxu2  ;;  %v594_v46 = vpop.f32.mrf.mxu0 }
  0xa7   :  { %v634_v43 = vpop.f32.mrf.mxu3  ;;  %v608_v48 = vpop.f32.mrf.mxu1  ;;  %v595_v49 = vadd.f32 %v2153_v32, %v594_v46  ;;  %v621_v51 = vadd.f32 %v620_v42, %v607_v47  ;;  %v2154_v32 = vld [vmem:[%s2922_s5] ss:$0 sm:$0xff] }
  0xa9   :  { %v609_v54 = vadd.f32 %v608_v48, %v595_v49  ;;  %v635_v56 = vadd.f32 %v634_v43, %v621_v51 }
  0xae   :  { %v622_v52 = vpop.f32.mrf.mxu2 }
  0xaf   :  { %v636_v53 = vpop.f32.mrf.mxu3  ;;  %v623_v58 = vadd.f32 %v622_v52, %v609_v54  ;;  %v2101_v54 = vld [vmem:[%s2925_s8 + $0x44] sm:$0xf] }
  0xb1   :  { %v637_v62 = vadd.f32 %v636_v53, %v623_v58  ;;  %v2121_v58 = vld [vmem:[%s2925_s8 + $0xdc] sm:$0xf0] }
  0xbe   :  { %v648_v55 = vpop.f32.mrf.mxu0 }
  0xbf   :  { %v662_v57 = vpop.f32.mrf.mxu1  ;;  %v649_v59 = vadd.f32 %v648_v55, %v635_v56  ;;  %v1883_v55 = vld [vmem:[%s2925_s8 + $0x60] sm:$0xf0] }
  0xc0   :  { %v1886_v56 = vor.u32 %v2101_v54, %v1883_v55  ;;  %v2097_v54 = vld [vmem:[%s2925_s8 + $0x1c] sm:$0xf0]  ;;  %v1857_v55 = vld [vmem:[%s2925_s8 + $0x8] sm:$0xf] }
  0xc1   :  { %v663_v0 = vadd.f32 %v662_v57, %v649_v59  ;;  %v1945_v57 = vld [vmem:[%s2925_s8 + $0xc0] sm:$0xf]  ;;  %v1953_v59 = vld [vmem:[%s2925_s8 + $0xc8] sm:$0xf] }
  0xc2   :  { %1098 = vmatpush.bf16.msra.mxu3 %v1886_v56 }
  0xc6   :  { %v676_v60 = vpop.f32.mrf.mxu2  ;;  %v650_v63 = vpop.f32.mrf.mxu0 }
  0xc7   :  { %v690_v61 = vpop.f32.mrf.mxu3  ;;  %v651_v1 = vadd.f32 %v650_v63, %v637_v62  ;;  %v677_v2 = vadd.f32 %v676_v60, %v663_v0  ;;  %v664_v3 = vpop.f32.mrf.mxu1  ;;  %v1946_v60 = vor.u32 %v2121_v58, %v1945_v57  ;;  %v2119_v62 = vld [vmem:[%s2925_s8 + $0xd4] sm:$0xf]  ;;  %v2098_v57 = vld [vmem:[%s2925_s8 + $0x24] sm:$0xf0] }
  0xc8   :  { %v1963_v63 = vld [vmem:[%s2925_s8 + $0xf0] sm:$0xf0] }
  0xc9   :  { %v665_v4 = vadd.f32 %v664_v3, %v651_v1  ;;  %v691_v5 = vadd.f32 %v690_v61, %v677_v2  ;;  %v2122_v61 = vld [vmem:[%s2925_s8 + $0xe4] sm:$0xf0]  ;;  %v1966_v1 = vor.u32 %v2119_v62, %v1963_v63  ;;  %v2093_v2 = vld [vmem:[%s2925_s8 + $0x4] sm:$0xf]  ;;  %1082 = vmatpush.bf16.msra.mxu2 %v1946_v60  ;;  %v2095_v58 = vld [vmem:[%s2925_s8 + $0x14] sm:$0xf]  ;;  %v1858_v60 = vor.u32 %v2098_v57, %v1857_v55 }
  0xca   :  { %v1954_v0 = vor.u32 %v2122_v61, %v1953_v59  ;;  %v1851_v3 = vld [vmem:[%s2925_s8 + $0x20] sm:$0xf0]  ;;  %v1867_v59 = vld [vmem:[%s2925_s8 + $0x30] sm:$0xf0]  ;;  %v1865_v62 = vld [vmem:[%s2925_s8 + $0x10] sm:$0xf] }
  0xcb   :  { %2157 = vtanh.f32 %v691_v5  ;;  %v1961_v5 = vld [vmem:[%s2925_s8 + $0xd0] sm:$0xf]  ;;  %1152 = vmatpush.bf16.msrb.mxu0 %v1966_v1  ;;  %v1870_v61 = vor.u32 %v2095_v58, %v1867_v59  ;;  %v2118_v1 = vld [vmem:[%s2925_s8 + $0xcc] sm:$0xf]  ;;  %v2112_v58 = vld [vmem:[%s2925_s8 + $0x9c] sm:$0xf] }
  0xcc   :  { %1110 = vmatpush.bf16.msrb.mxu1 %v1954_v0  ;;  %v2099_v63 = vld [vmem:[%s2925_s8 + $0x2c] sm:$0xf0]  ;;  %v1939_v59 = vld [vmem:[%s2925_s8 + $0xb8] sm:$0xf0] }
  0xcd   :  { %v1866_v0 = vor.u32 %v2099_v63, %v1865_v62  ;;  %v1942_v62 = vor.u32 %v2112_v58, %v1939_v59  ;;  %v2104_v63 = vld [vmem:[%s2925_s8 + $0x5c] sm:$0xf] }
  0xce   :  { %v678_v6 = vpop.f32.mrf.mxu2 }
  0xcf   :  { %v679_v7 = vadd.f32 %v678_v6, %v665_v4  ;;  %v692_v8 = vpop.f32.mrf.mxu3  ;;  %v1854_v4 = vor.u32 %v2093_v2, %v1851_v3  ;;  %v2123_v6 = vld [vmem:[%s2925_s8 + $0xec] sm:$0xf0]  ;;  %1153 = vmatpush.bf16.msrb.mxu0 %v1934_v25  ;;  %v1955_v2 = vld [vmem:[%s2925_s8 + $0xe8] sm:$0xf0]  ;;  %v1969_v3 = vld [vmem:[%s2925_s8 + $0xd8] sm:$0xf]  ;;  %v1894_v25 = vor.u32 %v2102_v22, %v1891_v23 }
  0xd1   :  { %v693_v9 = vadd.f32 %v692_v8, %v679_v7  ;;  %v2158_v10 = vpop.eup %2157  ;;  %v1962_v7 = vor.u32 %v2123_v6, %v1961_v5  ;;  %v1913_v8 = vld [vmem:[%s2925_s8 + $0x80] sm:$0xf]  ;;  %1099 = vmatpush.bf16.msra.mxu3 %v1854_v4  ;;  %v1958_v4 = vor.u32 %v2118_v1, %v1955_v2  ;;  %v2124_v5 = vld [vmem:[%s2925_s8 + $0xf4] sm:$0xf0]  ;;  %v2191_v1 = vmov 0   ;;  %v2130_v2 = vld [vmem:[%s2927_s10 + $0x28] sm:$0xff] }
  0xd2   :  { %v1970_v6 = vor.u32 %v2124_v5, %v1969_v3  ;;  %2151 = vset.pattern.permute.xlu2 %v2191_v1  ;;  %2152 = vset.pattern.permute.xlu0 %v2191_v1  ;;  %v1875_v5 = vld [vmem:[%s2925_s8 + $0x38] sm:$0xf0] }
  0xd3   :  { %2159 = vtanh.f32 %v693_v9  ;;  %v2113_v9 = vld [vmem:[%s2925_s8 + $0x9c] sm:$0xf0] }
  0xd5   :  { %1138 = vmatpush.bf16.msrb.mxu3 %v1962_v7  ;;  %v2110_v7 = vld [vmem:[%s2925_s8 + $0x8c] sm:$0xf] }
  0xd9   :  { %v2160_v11 = vpop.eup %2159  ;;  %1139 = vmatpush.bf16.msrb.mxu3 %v1930_v28  ;;  %v2094_v28 = vld [vmem:[%s2925_s8 + $0xc] sm:$0xf] }
  0xda   :  { %v2578_v20 = vpack.c.bf16 %v2160_v11, %v2158_v10  ;;  %v1921_v10 = vld [vmem:[%s2925_s8 + $0x88] sm:$0xf]  ;;  %v1914_v11 = vor.u32 %v2113_v9, %v1913_v8  ;;  %v1923_v8 = vld [vmem:[%s2925_s8 + $0xa8] sm:$0xf0]  ;;  %v1937_v9 = vld [vmem:[%s2925_s8 + $0x98] sm:$0xf] }
  0xdb   :  { %v1922_v24 = vor.u32 %v2114_v21, %v1921_v10  ;;  %v1926_v10 = vor.u32 %v2110_v7, %v1923_v8  ;;  %v2129_v7 = vld [vmem:[%s2927_s10 + $0x20] sm:$0xff] }
  0xdc   :  { %774 = vmatmul.bf16.vlgmr.msra.gmra.mxu0 %v2578_v20  ;;  %1083 = vmatpush.bf16.msra.mxu2 %v1914_v11  ;;  %v2116_v11 = vld [vmem:[%s2925_s8 + $0xb4] sm:$0xf0] }
  0xdd   :  { %1111 = vmatpush.bf16.msrb.mxu1 %v1922_v24  ;;  %v1938_v21 = vor.u32 %v2116_v11, %v1937_v9  ;;  %v1905_v24 = vld [vmem:[%s2925_s8 + $0x58] sm:$0xf]  ;;  %v2126_v11 = vld [vmem:[%s2927_s10 + $0x8] sm:$0xff] }
  0xde   :  { %v1906_v27 = vor.u32 %v2108_v26, %v1905_v24  ;;  %v2128_v9 = vld [vmem:[%s2927_s10 + $0x18] sm:$0xff]  ;;  %v2844_v24 = vld [vmem:[%s2926_s9] sm:$0xff] }
  0xdf   :  { %v899_v26 = vperm.slane %v2844_v24, 0 }
 0x159   :  { %v775_v30 = vpop.f32.mrf.mxu0 }
 0x15a   :  { %v2608_v43 = vadd.f32 %v2154_v32, %v775_v30  ;;  %v2105_v30 = vld [vmem:[%s2925_s8 + $0x5c] sm:$0xf0] }
 0x161   :  { %v777_v42 = vpop.f32.mrf.mxu0 }
 0x162   :  { %v778_v44 = vadd.f32 %v2154_v32, %v777_v42  ;;  %v1889_v32 = vld [vmem:[%s2925_s8 + $0x48] sm:$0xf]  ;;  %v1882_v42 = vor.u32 %v2105_v30, %v1881_v29  ;;  %v1859_v29 = vld [vmem:[%s2925_s8 + $0x28] sm:$0xf0]  ;;  %v1873_v30 = vld [vmem:[%s2925_s8 + $0x18] sm:$0xf] }
 0x164   :  { %v808_v45 = vpack.c.bf16 %v778_v44, %v2608_v43  ;;  %v784_v46 = vsel %vm782_vm1, %v778_v44, 0.0  ;;  %v794_v48 = vmul.f32 %v778_v44, %v778_v44  ;;  %v790_v49 = vadd.f32 1.0, %v778_v44  ;;  %v2106_v44 = vld [vmem:[%s2925_s8 + $0x64] sm:$0xf0]  ;;  %1084 = vmatpush.bf16.msra.mxu2 %v1882_v42  ;;  %v2100_v42 = vld [vmem:[%s2925_s8 + $0x34] sm:$0xf0] }
 0x165   :  { %v787_v47 = vmul.f32 1.442695, %v784_v46  ;;  %v1899_v46 = vld [vmem:[%s2925_s8 + $0x70] sm:$0xf0] }
 0x166   :  { %1846 = vmatmul.msk.bf16.vlgmr.msra.gmra.mxu1 %vm799_vm0, %v808_v45  ;;  %v796_v52 = vsub.f32 0.0, %v794_v48  ;;  %v2103_v45 = vld [vmem:[%s2925_s8 + $0x54] sm:$0xf] }
 0x167   :  { %2161 = vpow2.f32 %v787_v47  ;;  %v1890_v47 = vor.u32 %v2106_v44, %v1889_v32  ;;  %v1902_v48 = vor.u32 %v2103_v45, %v1899_v46  ;;  %v1862_v32 = vor.u32 %v2094_v28, %v1859_v29  ;;  %v2155_v46 = vld [vmem:[%s2924_s7] ss:$0 sm:$0xff] }
 0x168   :  { %v1874_v45 = vor.u32 %v2100_v42, %v1873_v30  ;;  %v901_v42 = vperm.slane %v2844_v24, 2 }
 0x169   :  { %1112 = vmatpush.bf16.msrb.mxu1 %v1890_v47  ;;  %1154 = vmatpush.bf16.msrb.mxu0 %v1902_v48 }
 0x16d   :  { %v2162_v50 = vpop.eup %2161  ;;  %1113 = vmatpush.bf16.msrb.mxu1 %v1858_v60  ;;  %1155 = vmatpush.bf16.msrb.mxu0 %v1870_v61  ;;  %v1348_v60 = vld [vmem:[%s2918_s1] sm:$0xff]  ;;  %v2131_v61 = vld [vmem:[%s2927_s10 + $0x30] sm:$0xff] }
 0x16e   :  { %v792_v51 = vsub.f32 %v790_v49, %v2162_v50  ;;  %v1897_v49 = vld [vmem:[%s2925_s8 + $0x50] sm:$0xf]  ;;  %1351 = vperm.xlu2 %2151, %v1348_v60  }
 0x16f   :  { %v2107_v50 = vld [vmem:[%s2925_s8 + $0x6c] sm:$0xf0] }
 0x170   :  { %v2617_v53 = vsel %vm782_vm1, %v792_v51, %v796_v52  ;;  %v1898_v51 = vor.u32 %v2107_v50, %v1897_v49  ;;  %v1849_v52 = vld [vmem:[%s2925_s8] sm:$0xf]  ;;  %v2120_v50 = vld [vmem:[%s2925_s8 + $0xdc] sm:$0xf] }
 0x171   :  { %v1850_v56 = vor.u32 %v2097_v54, %v1849_v52  ;;  %1166 = vmatpush.bf16.msra.mxu1 %v1970_v6  ;;  %v1349_v6 = vld [vmem:[%s2918_s1 + $0x8] sm:$0xff] }
 0x172   :  { %1140 = vmatpush.bf16.msrb.mxu3 %v1898_v51  ;;  %v1971_v51 = vld [vmem:[%s2925_s8 + $0xf8] sm:$0xf0] }
 0x173   :  { %1085 = vmatpush.bf16.msra.mxu2 %v1850_v56  ;;  %v2132_v56 = vld [vmem:[%s2927_s10 + $0x38] sm:$0xff]  ;;  %v1974_v57 = vor.u32 %v2120_v50, %v1971_v51  ;;  %v903_v50 = vperm.slane %v2844_v24, 4 }
 0x175   :  { %1167 = vmatpush.bf16.msra.mxu1 %v1938_v21  ;;  %v2125_v21 = vld [vmem:[%s2927_s10] sm:$0xff] }
 0x176   :  { %1141 = vmatpush.bf16.msrb.mxu3 %v1866_v0  ;;  %v1907_v0 = vld [vmem:[%s2925_s8 + $0x78] sm:$0xf0]  ;;  %1354 = vperm.xlu2 %2151, %v1349_v6  }
 0x177   :  { %1124 = vmatpush.bf16.msrb.mxu2 %v1958_v4  ;;  %v1910_v3 = vor.u32 %v2104_v63, %v1907_v0  ;;  %v2096_v4 = vld [vmem:[%s2925_s8 + $0x1c] sm:$0xf] }
 0x178   :  { %v1878_v8 = vor.u32 %v2096_v4, %v1875_v5 }
 0x179   :  { %1168 = vmatpush.bf16.msra.mxu1 %v1906_v27  ;;  %v900_v27 = vperm.slane %v2844_v24, 1 }
 0x17b   :  { %1125 = vmatpush.bf16.msrb.mxu2 %v1926_v10  ;;  %v2127_v10 = vld [vmem:[%s2927_s10 + $0x10] sm:$0xff] }
 0x17d   :  { %1169 = vmatpush.bf16.msra.mxu1 %v1874_v45 }
 0x17f   :  { %1126 = vmatpush.bf16.msrb.mxu2 %v1894_v25 }
 0x183   :  { %1127 = vmatpush.bf16.msrb.mxu2 %v1862_v32 }
 0x1e3   :  { %v857_v44 = vpop.f32.mrf.mxu1 }
 0x1e4   :  { %v858_v47 = vadd.f32 %v2155_v46, %v857_v44 }
 0x1e6   :  { %2163 = vtanh.f32 %v858_v47  ;;  %v902_v47 = vperm.slane %v2844_v24, 3 }
 0x1eb   :  { %v859_v48 = vpop.f32.mrf.mxu1 }
 0x1ec   :  { %v860_v49 = vadd.f32 %v2155_v46, %v859_v48  ;;  %v2164_v52 = vpop.eup %2163 }
 0x1ee   :  { %2165 = vtanh.f32 %v860_v49 }
 0x1f4   :  { %v2166_v54 = vpop.eup %2165 }
 0x1f5   :  { %v864_v55 = vpack.c.bf16 %v2166_v54, %v2164_v52 }
 0x1f7   :  { %1975 = vmatmul.msk.bf16.vlgmr.msra.gmra.mxu2 %vm799_vm0, %v864_v55  ;;  %1976 = vmatmul.msk.bf16.vlgmr.msra.gmra.mxu3 %vm799_vm0, %v864_v55 }
 0x1f8   :  { %1977 = vmatmul.msk.bf16.vlgmr.msrb.gmra.mxu1 %vm799_vm0, %v864_v55  ;;  %1980 = vmatmul.msk.bf16.vlgmr.msrb.gmra.mxu0 %vm799_vm0, %v864_v55 }
 0x1f9   :  { %1312 = vmatpush.bf16.msra.mxu3 %v2132_v56  ;;  %1180 = vmatpush.bf16.msra.mxu2 %v1974_v57  ;;  %v904_v56 = vperm.slane %v2844_v24, 5 }
 0x1fd   :  { %1313 = vmatpush.bf16.msra.mxu3 %v2131_v61  ;;  %1181 = vmatpush.bf16.msra.mxu2 %v1942_v62  ;;  %v905_v62 = vperm.slane %v2844_v24, 6 }
 0x201   :  { %1314 = vmatpush.bf16.msra.mxu3 %v2130_v2  ;;  %1182 = vmatpush.bf16.msra.mxu2 %v1910_v3 }
 0x205   :  { %1315 = vmatpush.bf16.msra.mxu3 %v2129_v7  ;;  %1183 = vmatpush.bf16.msra.mxu2 %v1878_v8  ;;  %v783_v8 = vsel %vm782_vm1, %v2608_v43, 0.0 }
 0x207   :  { %1978 = vmatmul.msk.bf16.vlgmr.msrb.gmra.mxu2 %vm799_vm0, %v864_v55  ;;  %1979 = vmatmul.msk.bf16.vlgmr.msrb.gmra.mxu3 %vm799_vm0, %v864_v55 }
 0x208   :  { %1981 = vmatmul.msk.bf16.vlgmr.msra.gmra.mxu1 %vm799_vm0, %v864_v55 }
 0x209   :  { %1316 = vmatpush.bf16.msra.mxu3 %v2128_v9 }
 0x20d   :  { %1317 = vmatpush.bf16.msra.mxu3 %v2127_v10  ;;  %v906_v10 = vperm.slane %v2844_v24, 7 }
 0x211   :  { %1318 = vmatpush.bf16.msra.mxu3 %v2126_v11 }
 0x215   :  { %1319 = vmatpush.bf16.msra.mxu3 %v2125_v21  ;;  %v2156_v21 = vld [vmem:[%s2928_s11] ss:$0 sm:$0xff]  ;;  %s2193_s11 = smov 0.0  }
 0x216   :  { %1526 = sst [smem:[#allocation2 + $0x7]] %s2193_s11 }
 0x217   :  { %1982 = vmatmul.msk.bf16.vlgmr.msra.gmra.mxu2 %vm799_vm0, %v864_v55 }
 0x218   :  { %1320 = vmatmul.bf16.vlgmr.msra.gmra.mxu3 %v2578_v20 }
 0x275   :  { %v1115_v25 = vpop.f32.mrf.mxu1 }
 0x276   :  { %v1116_v45 = vadd.f32 %v1115_v25, %v901_v42 }
 0x278   :  { %v1192_v54 = vsub.f32 %v2365_v34, %v1116_v45 }
 0x27a   :  { %v1087_v22 = vpop.f32.mrf.mxu2  ;;  %v1101_v23 = vpop.f32.mrf.mxu3  ;;  %v1208_v59 = vmul.f32 %v1192_v54, %v1192_v54 }
 0x27b   :  { %v1088_v28 = vadd.f32 %v1087_v22, %v899_v26  ;;  %v1102_v29 = vadd.f32 %v1101_v23, %v900_v27  ;;  %v785_v23 = vmul.f32 1.442695, %v783_v8 }
 0x27d   :  { %v1190_v20 = vsub.f32 %v2375_v36, %v1088_v28  ;;  %v1191_v44 = vsub.f32 %v2395_v40, %v1102_v29  ;;  %v1117_v46 = vpop.f32.mrf.mxu1  ;;  %v1157_v40 = vpop.f32.mrf.mxu0  ;;  %2167 = vpow2.f32 %v785_v23 }
 0x27e   :  { %v1158_v61 = vadd.f32 %v1157_v40, %v904_v56  ;;  %v1118_v25 = vadd.f32 %v1117_v46, %v901_v42 }
 0x27f   :  { %v1206_v48 = vmul.f32 %v1190_v20, %v1190_v20  ;;  %v1207_v49 = vmul.f32 %v1191_v44, %v1191_v44 }
 0x280   :  { %v1195_v6 = vsub.f32 %v2513_v14, %v1158_v61  ;;  %v1200_v44 = vsub.f32 %v2370_v35, %v1118_v25  ;;  %v793_v35 = vmul.f32 %v2608_v43, %v2608_v43 }
 0x281   :  { %v1222_v57 = vadd.f32 %v1207_v49, %v1206_v48 }
 0x282   :  { %v1089_v30 = vpop.f32.mrf.mxu2  ;;  %v1103_v32 = vpop.f32.mrf.mxu3  ;;  %v1211_v22 = vmul.f32 %v1195_v6, %v1195_v6  ;;  %v795_v61 = vsub.f32 0.0, %v793_v35 }
 0x283   :  { %v1223_v0 = vadd.f32 %v1222_v57, %v1208_v59  ;;  %v1090_v4 = vadd.f32 %v1089_v30, %v899_v26  ;;  %v1104_v5 = vadd.f32 %v1103_v32, %v900_v27  ;;  %v2168_v54 = vpop.eup %2167 }
 0x285   :  { %v1171_v63 = vpop.f32.mrf.mxu1  ;;  %v1198_v11 = vsub.f32 %v2380_v37, %v1090_v4  ;;  %v1159_v48 = vpop.f32.mrf.mxu0 }
 0x286   :  { %v1172_v7 = vadd.f32 %v1171_v63, %v905_v62  ;;  %v1160_v57 = vadd.f32 %v1159_v48, %v904_v56 }
 0x287   :  { %v1214_v32 = vmul.f32 %v1198_v11, %v1198_v11 }
 0x288   :  { %v1196_v14 = vsub.f32 %v2523_v16, %v1172_v7  ;;  %v1203_v63 = vsub.f32 %v2518_v15, %v1160_v57 }
 0x28a   :  { %v1129_v51 = vpop.f32.mrf.mxu2  ;;  %v1143_v52 = vpop.f32.mrf.mxu3  ;;  %v1212_v37 = vmul.f32 %v1196_v14, %v1196_v14  ;;  %v1219_v56 = vmul.f32 %v1203_v63, %v1203_v63 }
 0x28b   :  { %v1130_v55 = vadd.f32 %v1129_v51, %v902_v47  ;;  %v1144_v58 = vadd.f32 %v1143_v52, %v903_v50  ;;  %v1216_v51 = vmul.f32 %v1200_v44, %v1200_v44 }
 0x28d   :  { %v1193_v36 = vsub.f32 %v2385_v38, %v1130_v55  ;;  %v1194_v1 = vsub.f32 %v2503_v12, %v1144_v58  ;;  %v1199_v12 = vsub.f32 %v2400_v41, %v1104_v5  ;;  %v1173_v40 = vpop.f32.mrf.mxu1 }
 0x28f   :  { %v1209_v60 = vmul.f32 %v1193_v36, %v1193_v36  ;;  %v1210_v38 = vmul.f32 %v1194_v1, %v1194_v1  ;;  %v1215_v24 = vmul.f32 %v1199_v12, %v1199_v12 }
 0x291   :  { %v1224_v34 = vadd.f32 %v1223_v0, %v1209_v60  ;;  %v1231_v46 = vadd.f32 %v1215_v24, %v1214_v32  ;;  %v1174_v0 = vadd.f32 %v1173_v40, %v905_v62 }
 0x292   :  { %v1131_v2 = vpop.f32.mrf.mxu2  ;;  %v1145_v3 = vpop.f32.mrf.mxu3 }
 0x293   :  { %v1225_v9 = vadd.f32 %v1224_v34, %v1210_v38  ;;  %v1132_v26 = vadd.f32 %v1131_v2, %v902_v47  ;;  %v1146_v47 = vadd.f32 %v1145_v3, %v903_v50 }
 0x295   :  { %v1226_v30 = vadd.f32 %v1225_v9, %v1211_v22  ;;  %v1201_v45 = vsub.f32 %v2390_v39, %v1132_v26  ;;  %v1232_v39 = vadd.f32 %v1231_v46, %v1216_v51  ;;  %v1202_v36 = vsub.f32 %v2508_v13, %v1146_v47  ;;  %v1352_v22 = vpop.permute.xlu2 %1351 }
 0x296   :  { %v1204_v13 = vsub.f32 %v2528_v17, %v1174_v0  ;;  %vm1356_vm2 = vcmp.eq.s32.totalorder %v2606_v33, %v1352_v22  ;;  %v1379_v46 = vshrl.u32 %v780_v31, 7 }
 0x297   :  { %v1227_v42 = vadd.f32 %v1226_v30, %v1212_v37  ;;  %v1217_v52 = vmul.f32 %v1201_v45, %v1201_v45  ;;  %v1218_v1 = vmul.f32 %v1202_v36, %v1202_v36 }
 0x298   :  { %v1220_v6 = vmul.f32 %v1204_v13, %v1204_v13  ;;  %vm1405_vm4 = vcmp.ge.s32.totalorder %v1379_v46, 4  ;;  %vm1383_vm5 = vcmp.lt.s32.totalorder %v1379_v46, 4 }
 0x299   :  { %v1233_v59 = vadd.f32 %v1232_v39, %v1217_v52 }
 0x29a   :  { %v1185_v27 = vpop.f32.mrf.mxu2 }
 0x29b   :  { %v1186_v28 = vadd.f32 %v1185_v27, %v906_v10  ;;  %v1321_v29 = vpop.f32.mrf.mxu3  ;;  %v1234_v3 = vadd.f32 %v1233_v59, %v1218_v1  ;;  %v2192_v1 = vmov 0.0  }
 0x29c   :  { %v2869_v20 = vadd.f32 %v2156_v21, %v1321_v29 }
 0x29d   :  { %v1197_v41 = vsub.f32 %v2533_v18, %v1186_v28  ;;  %v789_v18 = vadd.f32 1.0, %v2608_v43  ;;  %v1235_v5 = vadd.f32 %v1234_v3, %v1219_v56  ;;  %v1355_v27 = vpop.permute.xlu2 %1354 }
 0x29e   :  { %1326 = vmax.xlane.f32.xlu0 %v2869_v20  ;;  %vm1357_vm3 = vcmp.eq.s32.totalorder %v2606_v33, %v1355_v27 }
 0x29f   :  { %v1213_v16 = vmul.f32 %v1197_v41, %v1197_v41  ;;  %v791_v60 = vsub.f32 %v789_v18, %v2168_v54  ;;  %v1236_v38 = vadd.f32 %v1235_v5, %v1220_v6 }
 0x2a1   :  { %v1228_v49 = vadd.f32 %v1227_v42, %v1213_v16  ;;  %v797_v43 = vsel %vm782_vm1, %v791_v60, %v795_v61 }
 0x2a2   :  { %v1187_v50 = vpop.f32.mrf.mxu2  ;;  %v800_v4 = vsel %vm799_vm0, %v797_v43, 0.0 }
 0x2a3   :  { %v1323_v55 = vpop.f32.mrf.mxu3  ;;  %1229 = vadd.xlane.f32.xlu2 %v1228_v49  ;;  %v1188_v2 = vadd.f32 %v1187_v50, %v906_v10 }
 0x2a4   :  { %v2879_v58 = vadd.f32 %v2156_v21, %v1323_v55  ;;  %v803_v21 = vsel %vm799_vm0, %v2617_v53, 0.0  ;;  %v1380_v55 = vadd.s32 8, %v1379_v46 }
 0x2a5   :  { %v1205_v34 = vsub.f32 %v2538_v19, %v1188_v2 }
 0x2a6   :  { %1328 = vmax.xlane.f32.xlu0 %v2879_v58  ;;  %v1367_v47 = vsel %vm1357_vm3, %v2879_v58, 0.0  ;;  %vm1452_vm7 = vcmp.ge.s32.totalorder %v1380_v55, 12  ;;  %vm1431_vm8 = vcmp.lt.s32.totalorder %v1380_v55, 12 }
 0x2a7   :  { %v1221_v7 = vmul.f32 %v1205_v34, %v1205_v34 }
 0x2a9   :  { %v1237_v15 = vadd.f32 %v1236_v38, %v1221_v7 }
 0x2ae   :  { %801 = vadd.xlane.f32.xlu0 %v800_v4 }
 0x2b6   :  { %1238 = vadd.xlane.f32.xlu0 %v1237_v15 }
 0x311   :  { %v1327_v62 = vpop.xlane.xlu0 %1326 }
 0x312   :  { %v1330_v8 = vsub.f32 %v2869_v20, %v1327_v62 }
 0x314   :  { %v1332_v9 = vmul.f32 1.442695, %v1330_v8 }
 0x316   :  { %2169 = vpow2.f32 %v1332_v9  ;;  %v1230_v41 = vpop.xlane.xlu2 %1229 }
 0x319   :  { %v2889_v10 = vpop.xlane.xlu0 %1328 }
 0x31a   :  { %v1331_v17 = vsub.f32 %v2879_v58, %v2889_v10 }
 0x31c   :  { %v2170_v19 = vpop.eup %2169  ;;  %v1334_v11 = vmul.f32 1.442695, %v1331_v17 }
 0x31d   :  { %1336 = vadd.xlane.f32.xlu1 %v2170_v19 }
 0x31e   :  { %2171 = vpow2.f32 %v1334_v11 }
 0x321   :  { %v802_v29 = vpop.xlane.xlu0 %801 }
 0x322   :  { %v806_v37 = vmul.f32 -0.5, %v802_v29 }
 0x324   :  { %v2172_v12 = vpop.eup %2171  ;;  %v1240_v45 = vadd.f32 %v1230_v41, %v806_v37 }
 0x325   :  { %1338 = vadd.xlane.f32.xlu1 %v2172_v12 }
 0x329   :  { %v1239_v51 = vpop.xlane.xlu0 %1238 }
 0x32d   :  { %804 = vadd.xlane.f32.xlu1 %v803_v21 }
 0x390   :  { %v1337_v14 = vpop.xlane.xlu1 %1336 }
 0x391   :  { %2173 = vlog2.f32 %v1337_v14 }
 0x397   :  { %v2174_v23 = vpop.eup %2173 }
 0x398   :  { %v1341_v25 = vmul.f32 0.6931472, %v2174_v23  ;;  %v1339_v26 = vpop.xlane.xlu1 %1338 }
 0x399   :  { %2175 = vlog2.f32 %v1339_v26 }
 0x39a   :  { %v1344_v28 = vadd.f32 %v1341_v25, %v1327_v62 }
 0x39c   :  { %v1346_v30 = vsub.f32 %v2869_v20, %v1344_v28  ;;  %v1242_v20 = vsub.f32 0.0, %v1240_v45 }
 0x39e   :  { %v1358_v32 = vsel %vm1356_vm2, %v1346_v30, 0.0  ;;  %v1411_v54 = vsel %vm1405_vm4, %v1242_v20, 0.0  ;;  %v1387_v33 = vsel %vm1383_vm5, %v1242_v20, 0.0 }
 0x39f   :  { %v2176_v24 = vpop.eup %2175  ;;  %1360 = vadd.xlane.f32.xlu1 %v1358_v32  ;;  %v1413_v18 = vsel %vm1389_vm6, %v1411_v54, 0.0  ;;  %v1390_v31 = vsel %vm1389_vm6, %v1387_v33, 0.0 }
 0x3a0   :  { %v1343_v53 = vmul.f32 0.6931472, %v2176_v24  ;;  %v805_v16 = vpop.xlane.xlu1 %804 }
 0x3a1   :  { %v807_v49 = vmul.f32 -0.5, %v805_v16 }
 0x3a2   :  { %v1345_v44 = vadd.f32 %v1343_v53, %v2889_v10 }
 0x3a3   :  { %v1241_v52 = vadd.f32 %v1239_v51, %v807_v49 }
 0x3a4   :  { %v1347_v42 = vsub.f32 %v2879_v58, %v1345_v44 }
 0x3a5   :  { %v1243_v35 = vsub.f32 0.0, %v1241_v52 }
 0x3a6   :  { %v1359_v48 = vsel %vm1357_vm3, %v1347_v42, 0.0 }
 0x3a7   :  { %1370 = vadd.xlane.f32.xlu1 %v1367_v47  ;;  %1362 = vadd.xlane.f32.xlu0 %v1359_v48  ;;  %v1458_v57 = vsel %vm1452_vm7, %v1243_v35, 0.0  ;;  %v1435_v39 = vsel %vm1431_vm8, %v1243_v35, 0.0 }
 0x3a8   :  { %v1460_v36 = vsel %vm1389_vm6, %v1458_v57, 0.0  ;;  %v1437_v58 = vsel %vm1389_vm6, %v1435_v39, 0.0 }
 0x3af   :  { %1416 = vadd.xlane.f32.xlu1 %v1413_v18  ;;  %1393 = vadd.xlane.f32.xlu0 %v1390_v31 }
 0x3b7   :  { %1462 = vadd.xlane.f32.xlu1 %v1460_v36  ;;  %1439 = vadd.xlane.f32.xlu0 %v1437_v58 }
 0x412   :  { %v1361_v40 = vpop.xlane.xlu1 %1360 }
 0x413   :  { %v1364_v50 = vsub.f32 0.0, %v1361_v40 }
 0x415   :  { %v1474_v59 = vsel %vm1383_vm5, %v1364_v50, 0.0 }
 0x416   :  { %v1476_v60 = vsel %vm1389_vm6, %v1474_v59, 0.0 }
 0x417   :  { %1479 = vadd.xlane.f32.xlu0 %v1476_v60 }
 0x41a   :  { %v1371_v61 = vpop.xlane.xlu1 %1370  ;;  %v1363_v63 = vpop.xlane.xlu0 %1362 }
 0x41b   :  { %vm1373_vm9 = vcmp.ge.f32.partialorder %v1371_v61, %v2889_v10  ;;  %v1365_v0 = vsub.f32 0.0, %v1363_v63 }
 0x41c   :  { %v2016_v2 = vsel %vm1373_vm9, 1.0, %v2192_v1 }
 0x41d   :  { %v1511_v3 = vsel %vm1389_vm6, %v2016_v2, 0.0  ;;  %v1492_v43 = vsel %vm1431_vm8, %v1365_v0, 0.0 }
 0x41e   :  { %1513 = vadd.xlane.f32.xlu2 %v1511_v3  ;;  %v1494_v56 = vsel %vm1389_vm6, %v1492_v43, 0.0 }
 0x41f   :  { %1496 = vadd.xlane.f32.xlu1 %v1494_v56 }
 0x422   :  { %v1417_v13 = vpop.xlane.xlu1 %1416  ;;  %v1394_v34 = vpop.xlane.xlu0 %1393 }
 0x423   :  { %v1418_v4 = vrot.slane %v1417_v13, 4  ;;  %v1395_v5 = vrot.slane %v1394_v34, 4 }
 0x425   :  { %v1419_v6 = vadd.f32 %v1418_v4, %v1417_v13  ;;  %v1396_v7 = vadd.f32 %v1395_v5, %v1394_v34 }
 0x427   :  { %v1420_v38 = vrot.slane %v1419_v6, 2  ;;  %v1397_v15 = vrot.slane %v1396_v7, 2 }
 0x429   :  { %v1398_v62 = vadd.f32 %v1397_v15, %v1396_v7  ;;  %v1421_v8 = vadd.f32 %v1420_v38, %v1419_v6 }
 0x42a   :  { %v1463_v9 = vpop.xlane.xlu1 %1462  ;;  %v1440_v10 = vpop.xlane.xlu0 %1439 }
 0x42b   :  { %v1464_v17 = vrot.slane %v1463_v9, 4  ;;  %v1441_v19 = vrot.slane %v1440_v10, 4  ;;  %v1399_v11 = vrot.slane %v1398_v62, 1  ;;  %v1422_v12 = vrot.slane %v1421_v8, 1 }
 0x42d   :  { %v1465_v21 = vadd.f32 %v1464_v17, %v1463_v9  ;;  %v1442_v22 = vadd.f32 %v1441_v19, %v1440_v10  ;;  %v1400_v14 = vadd.f32 %v1399_v11, %v1398_v62  ;;  %v1423_v23 = vadd.f32 %v1422_v12, %v1421_v8 }
 0x42f   :  { %v1466_v25 = vrot.slane %v1465_v21, 2  ;;  %v1443_v26 = vrot.slane %v1442_v22, 2  ;;  %2133 = vpush %v1400_v14 }
 0x430   :  { %2135 = vpush %v1423_v23 }
 0x431   :  { %v1444_v27 = vadd.f32 %v1443_v26, %v1442_v22  ;;  %v1467_v28 = vadd.f32 %v1466_v25, %v1465_v21 }
 0x433   :  { %v1445_v29 = vrot.slane %v1444_v27, 1  ;;  %v1468_v30 = vrot.slane %v1467_v28, 1 }
 0x435   :  { %v1446_v32 = vadd.f32 %v1445_v29, %v1444_v27  ;;  %v1469_v24 = vadd.f32 %v1468_v30, %v1467_v28 }
 0x437   :  { %2137 = vpush %v1446_v32 }
 0x438   :  { %2139 = vpush %v1469_v24 }
 0x460   :  { %s2134_s27 = spop %2133 }
 0x461   :  { %s1402_s28 = smul.f32 0.25, %s2134_s27  ;;  %s2136_s6 = spop %2135 }
 0x462   :  { %s1425_s2 = smul.f32 0.25, %s2136_s6 }
 0x463   :  { %1404 = sst [smem:[#allocation2]] %s1402_s28 }
 0x464   :  { %1427 = sst [smem:[#allocation2 + $0x1]] %s1425_s2 }
 0x468   :  { %s2138_s5 = spop %2137 }
 0x469   :  { %s1448_s29 = smul.f32 0.25, %s2138_s5  ;;  %s2140_s30 = spop %2139 }
 0x46a   :  { %s1471_s13 = smul.f32 0.25, %s2140_s30 }
 0x46b   :  { %1450 = sst [smem:[#allocation2 + $0x2]] %s1448_s29 }
 0x46c   :  { %1473 = sst [smem:[#allocation2 + $0x3]] %s1471_s13 }
 0x48a   :  { %v1480_v37 = vpop.xlane.xlu0 %1479 }
 0x48b   :  { %v1481_v53 = vrot.slane %v1480_v37, 4 }
 0x48d   :  { %v1482_v41 = vadd.f32 %v1481_v53, %v1480_v37 }
 0x48f   :  { %v1483_v44 = vrot.slane %v1482_v41, 2 }
 0x491   :  { %v1484_v45 = vadd.f32 %v1483_v44, %v1482_v41  ;;  %v1514_v16 = vpop.xlane.xlu2 %1513 }
 0x492   :  { %v1515_v42 = vrot.slane %v1514_v16, 4  ;;  %v1497_v46 = vpop.xlane.xlu1 %1496 }
 0x493   :  { %v1498_v47 = vrot.slane %v1497_v46, 4  ;;  %v1485_v48 = vrot.slane %v1484_v45, 1 }
 0x494   :  { %v1516_v20 = vadd.f32 %v1515_v42, %v1514_v16 }
 0x495   :  { %v1499_v49 = vadd.f32 %v1498_v47, %v1497_v46  ;;  %v1486_v51 = vadd.f32 %v1485_v48, %v1484_v45 }
 0x496   :  { %v1517_v52 = vrot.slane %v1516_v20, 2 }
 0x497   :  { %v1500_v54 = vrot.slane %v1499_v49, 2  ;;  %2141 = vpush %v1486_v51 }
 0x498   :  { %v1518_v33 = vadd.f32 %v1517_v52, %v1516_v20 }
 0x499   :  { %v1501_v55 = vadd.f32 %v1500_v54, %v1499_v49 }
 0x49a   :  { %v1519_v18 = vrot.slane %v1518_v33, 1 }
 0x49b   :  { %v1502_v31 = vrot.slane %v1501_v55, 1 }
 0x49c   :  { %v1520_v35 = vadd.f32 %v1519_v18, %v1518_v33 }
 0x49d   :  { %v1503_v57 = vadd.f32 %v1502_v31, %v1501_v55 }
 0x49f   :  { %2143 = vpush %v1503_v57 }
 0x4a0   :  { %2145 = vpush %v1520_v35 }
 0x4c8   :  { %s2142_s14 = spop %2141 }
 0x4c9   :  { %s1488_s15 = smul.f32 0.25, %s2142_s14 }
 0x4cb   :  { %1490 = sst [smem:[#allocation2 + $0x4]] %s1488_s15 }
 0x4d0   :  { %s2144_s4 = spop %2143 }
 0x4d1   :  { %s1505_s0 = smul.f32 0.25, %s2144_s4  ;;  %s2146_s18 = spop %2145 }
 0x4d2   :  { %s1522_s19 = smul.f32 0.125, %s2146_s18 }
 0x4d3   :  { %1507 = sst [smem:[#allocation2 + $0x5]] %s1505_s0 }
 0x4d4   :  { %1524 = sst [smem:[#allocation2 + $0x6]] %s1522_s19 }
 0x4d5   :  { %1535 = dma.smem_to_vmem %s2194_s20, 16, %s1533_s3, [#allocation3]  }
 0x4d6   :  { %2189 = dma.done.wait [#allocation3], 16  }
 0x4d7   :  { %2190 = vsyncadd [#allocation3], 4294967280 }
 0x4d8   :  { %1540 = sfence }
 0x4d9   :  { %1541 = vsyncpa [#allocation3], 1 }

</bundles_post_ra>
